<compile_context>
chip_gen: v6e
topology: v6e:2x2x1
jax: 0.10.0
libtpu: 0.0.40
codegen_flags: <defaults>
</compile_context>

<pallas_src>
import functools
import math

import jax
import jax.numpy as jnp
from jax.experimental import pallas as pl
from jax.experimental.pallas import tpu as pltpu

C_MID = 256      # hidden channels of the 3x3 conv
C_OUT = 2        # output channels of the 1x1 conv
C_OUT_PAD = 8    # output rows padded to one full sublane granule


def _round_up(x, m):
    return (x + m - 1) // m * m


def _offset_head_kernel(x_ref, w1_ref, b1_ref, w2_ref, b2_ref, o_ref, col_ref,
                        *, cin_pad, H, W):
    """One grid step processes nb whole images (L = nb*H*W lane columns).

    x_ref  : (cin_pad, L)        raw input, channels on sublanes, pixels on lanes
    w1_ref : (256, 9*cin_pad)    fused 3x3 conv weight (column order kh, kw, c)
    b1_ref : (256, 1)
    w2_ref : (8, 256)            1x1 conv weight, rows 2..7 zero
    b2_ref : (8, 1)
    o_ref  : (8, L)              output block (rows 0..1 real), lane-dense
    col_ref: (9*cin_pad, L)      VMEM im2col scratch
    """
    hw = H * W
    L = x_ref.shape[1]

    # Per-lane pixel bookkeeping (grid-invariant, cheap int VPU work, hoisted out of
    # the tap loop).  lane = img*hw + h*W + w.
    lane = jax.lax.broadcasted_iota(jnp.int32, (1, L), 1)
    pix = lane % hw        # h*W + w  (within-image index)
    ww = lane % W          # w

    x = x_ref[...]                                           # (cin_pad, L)

    # In-VMEM im2col: nine shifted + masked copies of the raw input, stacked on
    # sublanes.  Rolls never leak data across valid pixels: any tap that would cross
    # an image (or block) boundary is exactly the SAME-padding zero, enforced by the
    # mask below.
    taps = [(kh - 1, kw - 1) for kh in range(3) for kw in range(3)]
    for t, (dh, dw) in enumerate(taps):
        if dh == 0 and dw == 0:
            col_ref[pl.ds(t * cin_pad, cin_pad), :] = x
            continue
        s = dh * W + dw                                      # lane shift for this tap
        tap = pltpu.roll(x, shift=(-s) % L, axis=1)          # out[l] = x[l + s]
        # (h+dh) in [0,H)  <=>  pix + dh*W in [0, hw);  (w+dw) in [0, W).
        valid = ((pix + dh * W >= 0) & (pix + dh * W < hw)
                 & (ww + dw >= 0) & (ww + dw < W))
        col_ref[pl.ds(t * cin_pad, cin_pad), :] = jnp.where(valid, tap, 0)

    # conv3x3 as ONE fused matmul over K = 9*cin_pad (f32 accumulation) + bias + ReLU.
    h = jnp.dot(w1_ref[...], col_ref[...], preferred_element_type=jnp.float32)
    h = jnp.maximum(h + b1_ref[...], 0.0)

    # conv1x1 (+ bias); output rows padded to a full sublane granule.
    out = jnp.dot(w2_ref[...], h.astype(w2_ref.dtype),
                  preferred_element_type=jnp.float32)
    o_ref[...] = (out + b2_ref[...]).astype(o_ref.dtype)


def _tpu_vmem_and_cores():
    """Generation-aware VMEM capacity and TensorCore count, with safe fallbacks."""
    vmem = 64 << 20          # conservative default: v7x per-TensorCore VMEM
    cores = 1
    try:
        info = pltpu.get_tpu_info()
        vmem = int(getattr(info, "vmem_capacity_bytes", vmem) or vmem)
        cores = int(getattr(info, "num_cores", 0)
                    or getattr(info, "core_count", 0)
                    or getattr(info, "num_tensorcores", 0) or 1)
    except Exception:
        pass
    return vmem, cores


def _pick_images_per_step(N, hw, bytes_per_col, vmem_budget, n_cores):
    """Images per grid step: big blocks amortize the ~0.35us/step overhead, the VMEM
    budget caps them, and only multi-TensorCore parts (v7x) split for >= n_cores
    steps (never below the overhead-amortization target)."""
    nb_cap = max(1, vmem_budget // max(1, hw * bytes_per_col))
    nb = min(N, nb_cap)
    if n_cores > 1:
        nb_split = -(-N // n_cores)                     # ceil -> >= n_cores steps
        nb_amort = max(1, -(-2048 // hw))               # >= ~2048 lane cols / step
        nb = min(nb, max(nb_split, min(nb_amort, nb_cap)))
    nb = max(1, nb)
    # Multi-step lane blocks must be 128-lane aligned ((8,128) rule); a single-step
    # block equals the full (padded) array and is exempt.
    if nb < N and (nb * hw) % 128 != 0:
        gran = 128 // math.gcd(hw, 128)
        nb = max(gran, (nb // gran) * gran)
        # TODO(synk): tail-masked lane blocks for spatial sizes where this overshoots.
    return nb


def offset_head_pallas(x_nchw, w1, b1, w2, b2, *, input_dtype=jnp.float32):
    """x_nchw: (N, Cin, H, W) f32.  w1: (256, Cin, 3, 3), b1: (256,),
    w2: (2, 256, 1, 1), b2: (2,).  Returns (N, 2, H, W) f32."""
    N, Cin, H, W = x_nchw.shape
    hw = H * W
    cin_pad = _round_up(Cin, 8)          # sublane granule only — NOT 128
    k2 = 9 * cin_pad

    # ---- layout glue (cheap wrapper-side XLA) ------------------------------------
    # channels -> sublanes, batch-major pixels -> lanes
    x_t = jnp.transpose(x_nchw, (1, 0, 2, 3)).reshape(Cin, N * hw).astype(input_dtype)

    # fused 3x3 weight: (256, 9*cin_pad), column order (kh, kw, c) to match the taps
    w1_k = jnp.transpose(w1, (0, 2, 3, 1))                               # (256,3,3,Cin)
    w1_k = jnp.pad(w1_k, ((0, 0), (0, 0), (0, 0), (0, cin_pad - Cin)))
    w1_k = w1_k.reshape(C_MID, k2).astype(input_dtype)
    b1_k = b1.reshape(C_MID, 1).astype(jnp.float32)

    w2_k = jnp.pad(w2.reshape(C_OUT, C_MID),
                   ((0, C_OUT_PAD - C_OUT), (0, 0))).astype(input_dtype)
    b2_k = jnp.pad(b2.reshape(C_OUT, 1),
                   ((0, C_OUT_PAD - C_OUT), (0, 0))).astype(jnp.float32)

    # ---- generation-aware block sizing ---------------------------------------------
    vmem_cap, n_cores = _tpu_vmem_and_cores()
    itemsize = jnp.dtype(input_dtype).itemsize
    bytes_per_col = int(2 * cin_pad * itemsize     # input block (double-buffered)
                        + k2 * itemsize            # im2col scratch
                        + 3 * C_MID * 4            # (256, L) activation + temporaries
                        + 2 * C_OUT_PAD * 4)       # output block (double-buffered)
    budget = max(4 << 20, min(vmem_cap // 4, 16 << 20))
    nb = _pick_images_per_step(N, hw, bytes_per_col, budget, n_cores)

    num_steps = pl.cdiv(N, nb)
    L = nb * hw                                    # lane columns per grid step
    P = N * hw
    P_pad = num_steps * L                          # ragged N handled by lane padding
    x_t = jnp.pad(x_t, ((0, cin_pad - Cin), (0, P_pad - P)))

    weight_bytes = (k2 * C_MID + C_MID * C_OUT_PAD) * itemsize + (C_MID + C_OUT_PAD) * 4
    est_bytes = L * bytes_per_col + weight_bytes + (1 << 20)
    vmem_limit = int(min(vmem_cap, max(32 << 20, 2 * est_bytes)))

    kernel = functools.partial(_offset_head_kernel, cin_pad=cin_pad, H=H, W=W)

    out_flat = pl.pallas_call(
        kernel,
        out_shape=jax.ShapeDtypeStruct((C_OUT_PAD, P_pad), jnp.float32),
        grid_spec=pltpu.PrefetchScalarGridSpec(
            num_scalar_prefetch=0,
            grid=(num_steps,),
            in_specs=[
                pl.BlockSpec((cin_pad, L), lambda g: (0, g)),
                pl.BlockSpec((C_MID, k2), lambda g: (0, 0)),
                pl.BlockSpec((C_MID, 1), lambda g: (0, 0)),
                pl.BlockSpec((C_OUT_PAD, C_MID), lambda g: (0, 0)),
                pl.BlockSpec((C_OUT_PAD, 1), lambda g: (0, 0)),
            ],
            out_specs=pl.BlockSpec((C_OUT_PAD, L), lambda g: (0, g)),
            scratch_shapes=[pltpu.VMEM((k2, L), input_dtype)],
        ),
        compiler_params=pltpu.CompilerParams(
            dimension_semantics=("parallel",),
            vmem_limit_bytes=vmem_limit,
        ),
    )(x_t, w1_k, b1_k, w2_k, b2_k)

    # Columns are batch-major NCHW pixels: drop padded rows/lanes, restore dims.
    out = out_flat[:C_OUT, :P].reshape(C_OUT, N, H, W)
    return jnp.transpose(out, (1, 0, 2, 3))


def _reference(x_nchw, w1, b1, w2, b2):
    """Pure-JAX reference matching PyTorch semantics (NCHW)."""
    y = jax.lax.conv_general_dilated(
        x_nchw, w1, window_strides=(1, 1), padding=((1, 1), (1, 1)),
        dimension_numbers=("NCHW", "OIHW", "NCHW"))
    y = y + b1.reshape(1, -1, 1, 1)
    y = jnp.maximum(y, 0.0)
    z = jax.lax.conv_general_dilated(
        y, w2, window_strides=(1, 1), padding=((0, 0), (0, 0)),
        dimension_numbers=("NCHW", "OIHW", "NCHW"))
    return z + b2.reshape(1, -1, 1, 1)


if __name__ == "__main__":
    key = jax.random.PRNGKey(0)
    k_x, k_w1, k_b1, k_w2, k_b2 = jax.random.split(key, 5)

    N, Cin, H, W = 2, 4, 16, 16
    x = jax.random.normal(k_x, (N, Cin, H, W), dtype=jnp.float32)

    # Deterministic synthetic parameters (PyTorch Conv2d weight layout OIHW).
    w1 = jax.random.normal(k_w1, (C_MID, Cin, 3, 3), dtype=jnp.float32) * 0.05
    b1 = jax.random.normal(k_b1, (C_MID,), dtype=jnp.float32) * 0.05
    w2 = jax.random.normal(k_w2, (C_OUT, C_MID, 1, 1), dtype=jnp.float32) * 0.05
    b2 = jax.random.normal(k_b2, (C_OUT,), dtype=jnp.float32) * 0.05

    out = jax.block_until_ready(offset_head_pallas(x, w1, b1, w2, b2))
    ref = jax.block_until_ready(_reference(x, w1, b1, w2, b2))

    assert out.shape == (N, C_OUT, H, W), out.shape
    max_err = float(jnp.max(jnp.abs(out - ref)))
    assert jnp.allclose(out, ref, atol=2e-4, rtol=2e-4), max_err

    print("KERNEL_OK")
</pallas_src>

<mosaic_0001>
module attributes {stable_mosaic.version = 11 : i64} {
  func.func @_offset_head_kernel(%arg0: i32, %arg1: memref<8x512xf32, #tpu.memory_space<vmem>>, %arg2: memref<256x72xf32, #tpu.memory_space<vmem>>, %arg3: memref<256x1xf32, #tpu.memory_space<vmem>>, %arg4: memref<8x256xf32, #tpu.memory_space<vmem>>, %arg5: memref<8x1xf32, #tpu.memory_space<vmem>>, %arg6: memref<8x512xf32, #tpu.memory_space<vmem>>, %arg7: memref<72x512xf32, #tpu.memory_space<vmem>>) attributes {dimension_semantics = [#tpu.dimension_semantics<parallel>], iteration_bounds = array<i64: 1>, scalar_prefetch = 0 : i64, scratch_operands = 1 : i64, tpu.core_type = #tpu.core_type<tc>, window_params = [{transform_indices = @transform_0, window_bounds = array<i64: 8, 512>}, {pipeline_mode = #tpu.pipeline_mode<synchronous>, transform_indices = @transform_1, window_bounds = array<i64: 256, 72>}, {pipeline_mode = #tpu.pipeline_mode<synchronous>, transform_indices = @transform_2, window_bounds = array<i64: 256, 1>}, {pipeline_mode = #tpu.pipeline_mode<synchronous>, transform_indices = @transform_3, window_bounds = array<i64: 8, 256>}, {pipeline_mode = #tpu.pipeline_mode<synchronous>, transform_indices = @transform_4, window_bounds = array<i64: 8, 1>}, {transform_indices = @transform_5, window_bounds = array<i64: 8, 512>}]} {
    %0 = tpu.iota {dimensions = array<i32: 1>} : vector<1x512xi32>
    %c256_i32 = arith.constant 256 : i32
    %c0_i32 = arith.constant 0 : i32
    %1 = arith.cmpi eq, %c256_i32, %c0_i32 : i32
    %c1_i32 = arith.constant 1 : i32
    %2 = arith.select %1, %c1_i32, %c256_i32 : i32
    %3 = vector.broadcast %2 : i32 to vector<1x512xi32>
    %4 = arith.remsi %0, %3 : vector<1x512xi32>
    %c0_i32_0 = arith.constant 0 : i32
    %5 = vector.broadcast %c0_i32_0 : i32 to vector<1x512xi32>
    %6 = arith.cmpi ne, %4, %5 : vector<1x512xi32>
    %c0_i32_1 = arith.constant 0 : i32
    %7 = vector.broadcast %c0_i32_1 : i32 to vector<1x512xi32>
    %8 = arith.cmpi slt, %4, %7 : vector<1x512xi32>
    %c0_i32_2 = arith.constant 0 : i32
    %9 = arith.cmpi slt, %2, %c0_i32_2 : i32
    %10 = vector.broadcast %9 : i1 to vector<1x512xi1>
    %11 = vector.broadcast %10 : vector<1x512xi1> to vector<1x512xi1>
    %12 = arith.xori %8, %11 : vector<1x512xi1>
    %13 = arith.andi %12, %6 : vector<1x512xi1>
    %14 = vector.broadcast %2 : i32 to vector<1x512xi32>
    %15 = arith.addi %4, %14 : vector<1x512xi32>
    %16 = arith.select %13, %15, %4 : vector<1x512xi1>, vector<1x512xi32>
    %c16_i32 = arith.constant 16 : i32
    %c0_i32_3 = arith.constant 0 : i32
    %17 = arith.cmpi eq, %c16_i32, %c0_i32_3 : i32
    %c1_i32_4 = arith.constant 1 : i32
    %18 = arith.select %17, %c1_i32_4, %c16_i32 : i32
    %19 = vector.broadcast %18 : i32 to vector<1x512xi32>
    %20 = arith.remsi %0, %19 : vector<1x512xi32>
    %c0_i32_5 = arith.constant 0 : i32
    %21 = vector.broadcast %c0_i32_5 : i32 to vector<1x512xi32>
    %22 = arith.cmpi ne, %20, %21 : vector<1x512xi32>
    %c0_i32_6 = arith.constant 0 : i32
    %23 = vector.broadcast %c0_i32_6 : i32 to vector<1x512xi32>
    %24 = arith.cmpi slt, %20, %23 : vector<1x512xi32>
    %c0_i32_7 = arith.constant 0 : i32
    %25 = arith.cmpi slt, %18, %c0_i32_7 : i32
    %26 = vector.broadcast %25 : i1 to vector<1x512xi1>
    %27 = vector.broadcast %26 : vector<1x512xi1> to vector<1x512xi1>
    %28 = arith.xori %24, %27 : vector<1x512xi1>
    %29 = arith.andi %28, %22 : vector<1x512xi1>
    %30 = vector.broadcast %18 : i32 to vector<1x512xi32>
    %31 = arith.addi %20, %30 : vector<1x512xi32>
    %32 = arith.select %29, %31, %20 : vector<1x512xi1>, vector<1x512xi32>
    %c0 = arith.constant 0 : index
    %c0_8 = arith.constant 0 : index
    %33 = vector.load %arg1[%c0, %c0_8] : memref<8x512xf32, #tpu.memory_space<vmem>>, vector<8x512xf32>
    %c17_i32 = arith.constant 17 : i32
    %34 = tpu.dynamic_rotate %33 by %c17_i32 dim 1 : vector<8x512xf32>, i32 -> vector<8x512xf32>
    %c-16_i32 = arith.constant -16 : i32
    %35 = vector.broadcast %c-16_i32 : i32 to vector<1x512xi32>
    %36 = arith.addi %16, %35 : vector<1x512xi32>
    %c0_i32_9 = arith.constant 0 : i32
    %37 = vector.broadcast %c0_i32_9 : i32 to vector<1x512xi32>
    %38 = arith.cmpi sge, %36, %37 : vector<1x512xi32>
    %c-16_i32_10 = arith.constant -16 : i32
    %39 = vector.broadcast %c-16_i32_10 : i32 to vector<1x512xi32>
    %40 = arith.addi %16, %39 : vector<1x512xi32>
    %c256_i32_11 = arith.constant 256 : i32
    %41 = vector.broadcast %c256_i32_11 : i32 to vector<1x512xi32>
    %42 = arith.cmpi slt, %40, %41 : vector<1x512xi32>
    %43 = arith.andi %38, %42 : vector<1x512xi1>
    %c-1_i32 = arith.constant -1 : i32
    %44 = vector.broadcast %c-1_i32 : i32 to vector<1x512xi32>
    %45 = arith.addi %32, %44 : vector<1x512xi32>
    %c0_i32_12 = arith.constant 0 : i32
    %46 = vector.broadcast %c0_i32_12 : i32 to vector<1x512xi32>
    %47 = arith.cmpi sge, %45, %46 : vector<1x512xi32>
    %48 = arith.andi %43, %47 : vector<1x512xi1>
    %c-1_i32_13 = arith.constant -1 : i32
    %49 = vector.broadcast %c-1_i32_13 : i32 to vector<1x512xi32>
    %50 = arith.addi %32, %49 : vector<1x512xi32>
    %c16_i32_14 = arith.constant 16 : i32
    %51 = vector.broadcast %c16_i32_14 : i32 to vector<1x512xi32>
    %52 = arith.cmpi slt, %50, %51 : vector<1x512xi32>
    %53 = arith.andi %48, %52 : vector<1x512xi1>
    %c0_i32_15 = arith.constant 0 : i32
    %54 = arith.sitofp %c0_i32_15 : i32 to f32
    %55 = vector.shape_cast %53 : vector<1x512xi1> to vector<1x512xi1>
    %56 = vector.broadcast %55 : vector<1x512xi1> to vector<8x512xi1>
    %57 = vector.broadcast %54 : f32 to vector<8x512xf32>
    %58 = arith.select %56, %34, %57 : vector<8x512xi1>, vector<8x512xf32>
    %c0_16 = arith.constant 0 : index
    %c0_17 = arith.constant 0 : index
    %59 = vector.load %arg7[%c0_16, %c0_17] : memref<72x512xf32, #tpu.memory_space<vmem>>, vector<8x512xf32>
    tpu.vector_store %arg7[%c0_16, %c0_17], %58 {strides = array<i32>} : memref<72x512xf32, #tpu.memory_space<vmem>>, vector<8x512xf32>,
    %c16_i32_18 = arith.constant 16 : i32
    %60 = tpu.dynamic_rotate %33 by %c16_i32_18 dim 1 : vector<8x512xf32>, i32 -> vector<8x512xf32>
    %c-16_i32_19 = arith.constant -16 : i32
    %61 = vector.broadcast %c-16_i32_19 : i32 to vector<1x512xi32>
    %62 = arith.addi %16, %61 : vector<1x512xi32>
    %c0_i32_20 = arith.constant 0 : i32
    %63 = vector.broadcast %c0_i32_20 : i32 to vector<1x512xi32>
    %64 = arith.cmpi sge, %62, %63 : vector<1x512xi32>
    %c-16_i32_21 = arith.constant -16 : i32
    %65 = vector.broadcast %c-16_i32_21 : i32 to vector<1x512xi32>
    %66 = arith.addi %16, %65 : vector<1x512xi32>
    %c256_i32_22 = arith.constant 256 : i32
    %67 = vector.broadcast %c256_i32_22 : i32 to vector<1x512xi32>
    %68 = arith.cmpi slt, %66, %67 : vector<1x512xi32>
    %69 = arith.andi %64, %68 : vector<1x512xi1>
    %c0_i32_23 = arith.constant 0 : i32
    %70 = vector.broadcast %c0_i32_23 : i32 to vector<1x512xi32>
    %71 = arith.addi %32, %70 : vector<1x512xi32>
    %c0_i32_24 = arith.constant 0 : i32
    %72 = vector.broadcast %c0_i32_24 : i32 to vector<1x512xi32>
    %73 = arith.cmpi sge, %71, %72 : vector<1x512xi32>
    %74 = arith.andi %69, %73 : vector<1x512xi1>
    %c0_i32_25 = arith.constant 0 : i32
    %75 = vector.broadcast %c0_i32_25 : i32 to vector<1x512xi32>
    %76 = arith.addi %32, %75 : vector<1x512xi32>
    %c16_i32_26 = arith.constant 16 : i32
    %77 = vector.broadcast %c16_i32_26 : i32 to vector<1x512xi32>
    %78 = arith.cmpi slt, %76, %77 : vector<1x512xi32>
    %79 = arith.andi %74, %78 : vector<1x512xi1>
    %c0_i32_27 = arith.constant 0 : i32
    %80 = arith.sitofp %c0_i32_27 : i32 to f32
    %81 = vector.shape_cast %79 : vector<1x512xi1> to vector<1x512xi1>
    %82 = vector.broadcast %81 : vector<1x512xi1> to vector<8x512xi1>
    %83 = vector.broadcast %80 : f32 to vector<8x512xf32>
    %84 = arith.select %82, %60, %83 : vector<8x512xi1>, vector<8x512xf32>
    %c8 = arith.constant 8 : index
    %c0_28 = arith.constant 0 : index
    %85 = vector.load %arg7[%c8, %c0_28] : memref<72x512xf32, #tpu.memory_space<vmem>>, vector<8x512xf32>
    tpu.vector_store %arg7[%c8, %c0_28], %84 {strides = array<i32>} : memref<72x512xf32, #tpu.memory_space<vmem>>, vector<8x512xf32>,
    %c15_i32 = arith.constant 15 : i32
    %86 = tpu.dynamic_rotate %33 by %c15_i32 dim 1 : vector<8x512xf32>, i32 -> vector<8x512xf32>
    %c-16_i32_29 = arith.constant -16 : i32
    %87 = vector.broadcast %c-16_i32_29 : i32 to vector<1x512xi32>
    %88 = arith.addi %16, %87 : vector<1x512xi32>
    %c0_i32_30 = arith.constant 0 : i32
    %89 = vector.broadcast %c0_i32_30 : i32 to vector<1x512xi32>
    %90 = arith.cmpi sge, %88, %89 : vector<1x512xi32>
    %c-16_i32_31 = arith.constant -16 : i32
    %91 = vector.broadcast %c-16_i32_31 : i32 to vector<1x512xi32>
    %92 = arith.addi %16, %91 : vector<1x512xi32>
    %c256_i32_32 = arith.constant 256 : i32
    %93 = vector.broadcast %c256_i32_32 : i32 to vector<1x512xi32>
    %94 = arith.cmpi slt, %92, %93 : vector<1x512xi32>
    %95 = arith.andi %90, %94 : vector<1x512xi1>
    %c1_i32_33 = arith.constant 1 : i32
    %96 = vector.broadcast %c1_i32_33 : i32 to vector<1x512xi32>
    %97 = arith.addi %32, %96 : vector<1x512xi32>
    %c0_i32_34 = arith.constant 0 : i32
    %98 = vector.broadcast %c0_i32_34 : i32 to vector<1x512xi32>
    %99 = arith.cmpi sge, %97, %98 : vector<1x512xi32>
    %100 = arith.andi %95, %99 : vector<1x512xi1>
    %c1_i32_35 = arith.constant 1 : i32
    %101 = vector.broadcast %c1_i32_35 : i32 to vector<1x512xi32>
    %102 = arith.addi %32, %101 : vector<1x512xi32>
    %c16_i32_36 = arith.constant 16 : i32
    %103 = vector.broadcast %c16_i32_36 : i32 to vector<1x512xi32>
    %104 = arith.cmpi slt, %102, %103 : vector<1x512xi32>
    %105 = arith.andi %100, %104 : vector<1x512xi1>
    %c0_i32_37 = arith.constant 0 : i32
    %106 = arith.sitofp %c0_i32_37 : i32 to f32
    %107 = vector.shape_cast %105 : vector<1x512xi1> to vector<1x512xi1>
    %108 = vector.broadcast %107 : vector<1x512xi1> to vector<8x512xi1>
    %109 = vector.broadcast %106 : f32 to vector<8x512xf32>
    %110 = arith.select %108, %86, %109 : vector<8x512xi1>, vector<8x512xf32>
    %c16 = arith.constant 16 : index
    %c0_38 = arith.constant 0 : index
    %111 = vector.load %arg7[%c16, %c0_38] : memref<72x512xf32, #tpu.memory_space<vmem>>, vector<8x512xf32>
    tpu.vector_store %arg7[%c16, %c0_38], %110 {strides = array<i32>} : memref<72x512xf32, #tpu.memory_space<vmem>>, vector<8x512xf32>,
    %c1_i32_39 = arith.constant 1 : i32
    %112 = tpu.dynamic_rotate %33 by %c1_i32_39 dim 1 : vector<8x512xf32>, i32 -> vector<8x512xf32>
    %c0_i32_40 = arith.constant 0 : i32
    %113 = vector.broadcast %c0_i32_40 : i32 to vector<1x512xi32>
    %114 = arith.addi %16, %113 : vector<1x512xi32>
    %c0_i32_41 = arith.constant 0 : i32
    %115 = vector.broadcast %c0_i32_41 : i32 to vector<1x512xi32>
    %116 = arith.cmpi sge, %114, %115 : vector<1x512xi32>
    %c0_i32_42 = arith.constant 0 : i32
    %117 = vector.broadcast %c0_i32_42 : i32 to vector<1x512xi32>
    %118 = arith.addi %16, %117 : vector<1x512xi32>
    %c256_i32_43 = arith.constant 256 : i32
    %119 = vector.broadcast %c256_i32_43 : i32 to vector<1x512xi32>
    %120 = arith.cmpi slt, %118, %119 : vector<1x512xi32>
    %121 = arith.andi %116, %120 : vector<1x512xi1>
    %c-1_i32_44 = arith.constant -1 : i32
    %122 = vector.broadcast %c-1_i32_44 : i32 to vector<1x512xi32>
    %123 = arith.addi %32, %122 : vector<1x512xi32>
    %c0_i32_45 = arith.constant 0 : i32
    %124 = vector.broadcast %c0_i32_45 : i32 to vector<1x512xi32>
    %125 = arith.cmpi sge, %123, %124 : vector<1x512xi32>
    %126 = arith.andi %121, %125 : vector<1x512xi1>
    %c-1_i32_46 = arith.constant -1 : i32
    %127 = vector.broadcast %c-1_i32_46 : i32 to vector<1x512xi32>
    %128 = arith.addi %32, %127 : vector<1x512xi32>
    %c16_i32_47 = arith.constant 16 : i32
    %129 = vector.broadcast %c16_i32_47 : i32 to vector<1x512xi32>
    %130 = arith.cmpi slt, %128, %129 : vector<1x512xi32>
    %131 = arith.andi %126, %130 : vector<1x512xi1>
    %c0_i32_48 = arith.constant 0 : i32
    %132 = arith.sitofp %c0_i32_48 : i32 to f32
    %133 = vector.shape_cast %131 : vector<1x512xi1> to vector<1x512xi1>
    %134 = vector.broadcast %133 : vector<1x512xi1> to vector<8x512xi1>
    %135 = vector.broadcast %132 : f32 to vector<8x512xf32>
    %136 = arith.select %134, %112, %135 : vector<8x512xi1>, vector<8x512xf32>
    %c24 = arith.constant 24 : index
    %c0_49 = arith.constant 0 : index
    %137 = vector.load %arg7[%c24, %c0_49] : memref<72x512xf32, #tpu.memory_space<vmem>>, vector<8x512xf32>
    tpu.vector_store %arg7[%c24, %c0_49], %136 {strides = array<i32>} : memref<72x512xf32, #tpu.memory_space<vmem>>, vector<8x512xf32>,
    %c32 = arith.constant 32 : index
    %c0_50 = arith.constant 0 : index
    %138 = vector.load %arg7[%c32, %c0_50] : memref<72x512xf32, #tpu.memory_space<vmem>>, vector<8x512xf32>
    tpu.vector_store %arg7[%c32, %c0_50], %33 {strides = array<i32>} : memref<72x512xf32, #tpu.memory_space<vmem>>, vector<8x512xf32>,
    %c511_i32 = arith.constant 511 : i32
    %139 = tpu.dynamic_rotate %33 by %c511_i32 dim 1 : vector<8x512xf32>, i32 -> vector<8x512xf32>
    %c0_i32_51 = arith.constant 0 : i32
    %140 = vector.broadcast %c0_i32_51 : i32 to vector<1x512xi32>
    %141 = arith.addi %16, %140 : vector<1x512xi32>
    %c0_i32_52 = arith.constant 0 : i32
    %142 = vector.broadcast %c0_i32_52 : i32 to vector<1x512xi32>
    %143 = arith.cmpi sge, %141, %142 : vector<1x512xi32>
    %c0_i32_53 = arith.constant 0 : i32
    %144 = vector.broadcast %c0_i32_53 : i32 to vector<1x512xi32>
    %145 = arith.addi %16, %144 : vector<1x512xi32>
    %c256_i32_54 = arith.constant 256 : i32
    %146 = vector.broadcast %c256_i32_54 : i32 to vector<1x512xi32>
    %147 = arith.cmpi slt, %145, %146 : vector<1x512xi32>
    %148 = arith.andi %143, %147 : vector<1x512xi1>
    %c1_i32_55 = arith.constant 1 : i32
    %149 = vector.broadcast %c1_i32_55 : i32 to vector<1x512xi32>
    %150 = arith.addi %32, %149 : vector<1x512xi32>
    %c0_i32_56 = arith.constant 0 : i32
    %151 = vector.broadcast %c0_i32_56 : i32 to vector<1x512xi32>
    %152 = arith.cmpi sge, %150, %151 : vector<1x512xi32>
    %153 = arith.andi %148, %152 : vector<1x512xi1>
    %c1_i32_57 = arith.constant 1 : i32
    %154 = vector.broadcast %c1_i32_57 : i32 to vector<1x512xi32>
    %155 = arith.addi %32, %154 : vector<1x512xi32>
    %c16_i32_58 = arith.constant 16 : i32
    %156 = vector.broadcast %c16_i32_58 : i32 to vector<1x512xi32>
    %157 = arith.cmpi slt, %155, %156 : vector<1x512xi32>
    %158 = arith.andi %153, %157 : vector<1x512xi1>
    %c0_i32_59 = arith.constant 0 : i32
    %159 = arith.sitofp %c0_i32_59 : i32 to f32
    %160 = vector.shape_cast %158 : vector<1x512xi1> to vector<1x512xi1>
    %161 = vector.broadcast %160 : vector<1x512xi1> to vector<8x512xi1>
    %162 = vector.broadcast %159 : f32 to vector<8x512xf32>
    %163 = arith.select %161, %139, %162 : vector<8x512xi1>, vector<8x512xf32>
    %c40 = arith.constant 40 : index
    %c0_60 = arith.constant 0 : index
    %164 = vector.load %arg7[%c40, %c0_60] : memref<72x512xf32, #tpu.memory_space<vmem>>, vector<8x512xf32>
    tpu.vector_store %arg7[%c40, %c0_60], %163 {strides = array<i32>} : memref<72x512xf32, #tpu.memory_space<vmem>>, vector<8x512xf32>,
    %c497_i32 = arith.constant 497 : i32
    %165 = tpu.dynamic_rotate %33 by %c497_i32 dim 1 : vector<8x512xf32>, i32 -> vector<8x512xf32>
    %c16_i32_61 = arith.constant 16 : i32
    %166 = vector.broadcast %c16_i32_61 : i32 to vector<1x512xi32>
    %167 = arith.addi %16, %166 : vector<1x512xi32>
    %c0_i32_62 = arith.constant 0 : i32
    %168 = vector.broadcast %c0_i32_62 : i32 to vector<1x512xi32>
    %169 = arith.cmpi sge, %167, %168 : vector<1x512xi32>
    %c16_i32_63 = arith.constant 16 : i32
    %170 = vector.broadcast %c16_i32_63 : i32 to vector<1x512xi32>
    %171 = arith.addi %16, %170 : vector<1x512xi32>
    %c256_i32_64 = arith.constant 256 : i32
    %172 = vector.broadcast %c256_i32_64 : i32 to vector<1x512xi32>
    %173 = arith.cmpi slt, %171, %172 : vector<1x512xi32>
    %174 = arith.andi %169, %173 : vector<1x512xi1>
    %c-1_i32_65 = arith.constant -1 : i32
    %175 = vector.broadcast %c-1_i32_65 : i32 to vector<1x512xi32>
    %176 = arith.addi %32, %175 : vector<1x512xi32>
    %c0_i32_66 = arith.constant 0 : i32
    %177 = vector.broadcast %c0_i32_66 : i32 to vector<1x512xi32>
    %178 = arith.cmpi sge, %176, %177 : vector<1x512xi32>
    %179 = arith.andi %174, %178 : vector<1x512xi1>
    %c-1_i32_67 = arith.constant -1 : i32
    %180 = vector.broadcast %c-1_i32_67 : i32 to vector<1x512xi32>
    %181 = arith.addi %32, %180 : vector<1x512xi32>
    %c16_i32_68 = arith.constant 16 : i32
    %182 = vector.broadcast %c16_i32_68 : i32 to vector<1x512xi32>
    %183 = arith.cmpi slt, %181, %182 : vector<1x512xi32>
    %184 = arith.andi %179, %183 : vector<1x512xi1>
    %c0_i32_69 = arith.constant 0 : i32
    %185 = arith.sitofp %c0_i32_69 : i32 to f32
    %186 = vector.shape_cast %184 : vector<1x512xi1> to vector<1x512xi1>
    %187 = vector.broadcast %186 : vector<1x512xi1> to vector<8x512xi1>
    %188 = vector.broadcast %185 : f32 to vector<8x512xf32>
    %189 = arith.select %187, %165, %188 : vector<8x512xi1>, vector<8x512xf32>
    %c48 = arith.constant 48 : index
    %c0_70 = arith.constant 0 : index
    %190 = vector.load %arg7[%c48, %c0_70] : memref<72x512xf32, #tpu.memory_space<vmem>>, vector<8x512xf32>
    tpu.vector_store %arg7[%c48, %c0_70], %189 {strides = array<i32>} : memref<72x512xf32, #tpu.memory_space<vmem>>, vector<8x512xf32>,
    %c496_i32 = arith.constant 496 : i32
    %191 = tpu.dynamic_rotate %33 by %c496_i32 dim 1 : vector<8x512xf32>, i32 -> vector<8x512xf32>
    %c16_i32_71 = arith.constant 16 : i32
    %192 = vector.broadcast %c16_i32_71 : i32 to vector<1x512xi32>
    %193 = arith.addi %16, %192 : vector<1x512xi32>
    %c0_i32_72 = arith.constant 0 : i32
    %194 = vector.broadcast %c0_i32_72 : i32 to vector<1x512xi32>
    %195 = arith.cmpi sge, %193, %194 : vector<1x512xi32>
    %c16_i32_73 = arith.constant 16 : i32
    %196 = vector.broadcast %c16_i32_73 : i32 to vector<1x512xi32>
    %197 = arith.addi %16, %196 : vector<1x512xi32>
    %c256_i32_74 = arith.constant 256 : i32
    %198 = vector.broadcast %c256_i32_74 : i32 to vector<1x512xi32>
    %199 = arith.cmpi slt, %197, %198 : vector<1x512xi32>
    %200 = arith.andi %195, %199 : vector<1x512xi1>
    %c0_i32_75 = arith.constant 0 : i32
    %201 = vector.broadcast %c0_i32_75 : i32 to vector<1x512xi32>
    %202 = arith.addi %32, %201 : vector<1x512xi32>
    %c0_i32_76 = arith.constant 0 : i32
    %203 = vector.broadcast %c0_i32_76 : i32 to vector<1x512xi32>
    %204 = arith.cmpi sge, %202, %203 : vector<1x512xi32>
    %205 = arith.andi %200, %204 : vector<1x512xi1>
    %c0_i32_77 = arith.constant 0 : i32
    %206 = vector.broadcast %c0_i32_77 : i32 to vector<1x512xi32>
    %207 = arith.addi %32, %206 : vector<1x512xi32>
    %c16_i32_78 = arith.constant 16 : i32
    %208 = vector.broadcast %c16_i32_78 : i32 to vector<1x512xi32>
    %209 = arith.cmpi slt, %207, %208 : vector<1x512xi32>
    %210 = arith.andi %205, %209 : vector<1x512xi1>
    %c0_i32_79 = arith.constant 0 : i32
    %211 = arith.sitofp %c0_i32_79 : i32 to f32
    %212 = vector.shape_cast %210 : vector<1x512xi1> to vector<1x512xi1>
    %213 = vector.broadcast %212 : vector<1x512xi1> to vector<8x512xi1>
    %214 = vector.broadcast %211 : f32 to vector<8x512xf32>
    %215 = arith.select %213, %191, %214 : vector<8x512xi1>, vector<8x512xf32>
    %c56 = arith.constant 56 : index
    %c0_80 = arith.constant 0 : index
    %216 = vector.load %arg7[%c56, %c0_80] : memref<72x512xf32, #tpu.memory_space<vmem>>, vector<8x512xf32>
    tpu.vector_store %arg7[%c56, %c0_80], %215 {strides = array<i32>} : memref<72x512xf32, #tpu.memory_space<vmem>>, vector<8x512xf32>,
    %c495_i32 = arith.constant 495 : i32
    %217 = tpu.dynamic_rotate %33 by %c495_i32 dim 1 : vector<8x512xf32>, i32 -> vector<8x512xf32>
    %c16_i32_81 = arith.constant 16 : i32
    %218 = vector.broadcast %c16_i32_81 : i32 to vector<1x512xi32>
    %219 = arith.addi %16, %218 : vector<1x512xi32>
    %c0_i32_82 = arith.constant 0 : i32
    %220 = vector.broadcast %c0_i32_82 : i32 to vector<1x512xi32>
    %221 = arith.cmpi sge, %219, %220 : vector<1x512xi32>
    %c16_i32_83 = arith.constant 16 : i32
    %222 = vector.broadcast %c16_i32_83 : i32 to vector<1x512xi32>
    %223 = arith.addi %16, %222 : vector<1x512xi32>
    %c256_i32_84 = arith.constant 256 : i32
    %224 = vector.broadcast %c256_i32_84 : i32 to vector<1x512xi32>
    %225 = arith.cmpi slt, %223, %224 : vector<1x512xi32>
    %226 = arith.andi %221, %225 : vector<1x512xi1>
    %c1_i32_85 = arith.constant 1 : i32
    %227 = vector.broadcast %c1_i32_85 : i32 to vector<1x512xi32>
    %228 = arith.addi %32, %227 : vector<1x512xi32>
    %c0_i32_86 = arith.constant 0 : i32
    %229 = vector.broadcast %c0_i32_86 : i32 to vector<1x512xi32>
    %230 = arith.cmpi sge, %228, %229 : vector<1x512xi32>
    %231 = arith.andi %226, %230 : vector<1x512xi1>
    %c1_i32_87 = arith.constant 1 : i32
    %232 = vector.broadcast %c1_i32_87 : i32 to vector<1x512xi32>
    %233 = arith.addi %32, %232 : vector<1x512xi32>
    %c16_i32_88 = arith.constant 16 : i32
    %234 = vector.broadcast %c16_i32_88 : i32 to vector<1x512xi32>
    %235 = arith.cmpi slt, %233, %234 : vector<1x512xi32>
    %236 = arith.andi %231, %235 : vector<1x512xi1>
    %c0_i32_89 = arith.constant 0 : i32
    %237 = arith.sitofp %c0_i32_89 : i32 to f32
    %238 = vector.shape_cast %236 : vector<1x512xi1> to vector<1x512xi1>
    %239 = vector.broadcast %238 : vector<1x512xi1> to vector<8x512xi1>
    %240 = vector.broadcast %237 : f32 to vector<8x512xf32>
    %241 = arith.select %239, %217, %240 : vector<8x512xi1>, vector<8x512xf32>
    %c64 = arith.constant 64 : index
    %c0_90 = arith.constant 0 : index
    %242 = vector.load %arg7[%c64, %c0_90] : memref<72x512xf32, #tpu.memory_space<vmem>>, vector<8x512xf32>
    tpu.vector_store %arg7[%c64, %c0_90], %241 {strides = array<i32>} : memref<72x512xf32, #tpu.memory_space<vmem>>, vector<8x512xf32>,
    %c0_91 = arith.constant 0 : index
    %c0_92 = arith.constant 0 : index
    %243 = vector.load %arg2[%c0_91, %c0_92] : memref<256x72xf32, #tpu.memory_space<vmem>>, vector<256x72xf32>
    %c0_93 = arith.constant 0 : index
    %c0_94 = arith.constant 0 : index
    %244 = vector.load %arg7[%c0_93, %c0_94] : memref<72x512xf32, #tpu.memory_space<vmem>>, vector<72x512xf32>
    %cst = arith.constant dense<0.000000e+00> : vector<256x512xf32>
    %245 = tpu.matmul %243, %244, %cst {dimension_numbers = #tpu.dot_dimension_numbers<[1], [0], [0], [1], [0, 0, 1, 1], [], []>} : vector<256x72xf32>, vector<72x512xf32>, vector<256x512xf32> -> vector<256x512xf32>
    %c0_95 = arith.constant 0 : index
    %c0_96 = arith.constant 0 : index
    %246 = vector.load %arg3[%c0_95, %c0_96] : memref<256x1xf32, #tpu.memory_space<vmem>>, vector<256x1xf32>
    %247 = vector.broadcast %246 : vector<256x1xf32> to vector<256x512xf32>
    %248 = arith.addf %245, %247 : vector<256x512xf32>
    %cst_97 = arith.constant 0.000000e+00 : f32
    %249 = vector.broadcast %cst_97 : f32 to vector<256x512xf32>
    %250 = arith.maximumf %248, %249 : vector<256x512xf32>
    %c0_98 = arith.constant 0 : index
    %c0_99 = arith.constant 0 : index
    %251 = vector.load %arg4[%c0_98, %c0_99] : memref<8x256xf32, #tpu.memory_space<vmem>>, vector<8x256xf32>
    %cst_100 = arith.constant dense<0.000000e+00> : vector<8x512xf32>
    %252 = tpu.matmul %251, %250, %cst_100 {dimension_numbers = #tpu.dot_dimension_numbers<[1], [0], [0], [1], [0, 0, 1, 1], [], []>} : vector<8x256xf32>, vector<256x512xf32>, vector<8x512xf32> -> vector<8x512xf32>
    %c0_101 = arith.constant 0 : index
    %c0_102 = arith.constant 0 : index
    %253 = vector.load %arg5[%c0_101, %c0_102] : memref<8x1xf32, #tpu.memory_space<vmem>>, vector<8x1xf32>
    %254 = vector.broadcast %253 : vector<8x1xf32> to vector<8x512xf32>
    %255 = arith.addf %252, %254 : vector<8x512xf32>
    %c0_103 = arith.constant 0 : index
    %c0_104 = arith.constant 0 : index
    %256 = vector.load %arg6[%c0_103, %c0_104] : memref<8x512xf32, #tpu.memory_space<vmem>>, vector<8x512xf32>
    tpu.vector_store %arg6[%c0_103, %c0_104], %255 {strides = array<i32>} : memref<8x512xf32, #tpu.memory_space<vmem>>, vector<8x512xf32>,
    return
  }
  func.func @transform_0(%arg0: i32) -> (i32, i32) {
    %c0_i32 = arith.constant 0 : i32
    %c0_i32_0 = arith.constant 0 : i32
    return %c0_i32, %arg0 : i32, i32
  }
  func.func @transform_1(%arg0: i32) -> (i32, i32) {
    %c0_i32 = arith.constant 0 : i32
    %c0_i32_0 = arith.constant 0 : i32
    %c0_i32_1 = arith.constant 0 : i32
    return %c0_i32, %c0_i32_0 : i32, i32
  }
  func.func @transform_2(%arg0: i32) -> (i32, i32) {
    %c0_i32 = arith.constant 0 : i32
    %c0_i32_0 = arith.constant 0 : i32
    %c0_i32_1 = arith.constant 0 : i32
    return %c0_i32, %c0_i32_0 : i32, i32
  }
  func.func @transform_3(%arg0: i32) -> (i32, i32) {
    %c0_i32 = arith.constant 0 : i32
    %c0_i32_0 = arith.constant 0 : i32
    %c0_i32_1 = arith.constant 0 : i32
    return %c0_i32, %c0_i32_0 : i32, i32
  }
  func.func @transform_4(%arg0: i32) -> (i32, i32) {
    %c0_i32 = arith.constant 0 : i32
    %c0_i32_0 = arith.constant 0 : i32
    %c0_i32_1 = arith.constant 0 : i32
    return %c0_i32, %c0_i32_0 : i32, i32
  }
  func.func @transform_5(%arg0: i32) -> (i32, i32) {
    %c0_i32 = arith.constant 0 : i32
    %c0_i32_0 = arith.constant 0 : i32
    return %c0_i32, %arg0 : i32, i32
  }
}

</mosaic_0001>

<bundles_post_ra>
// kernel: tpu_custom_call.1
= control target key start
LH: loop header
LB: loop body
LE: loop exit
PB: predicated region body
PF: predicated region fallthrough
CT: control target
= control target key end

     0   :  { %s1796_s22 = smov 111   ;;  %s2730_s0 = inlined_call_operand.vmem [shape: f32[8,512], index: 0, kind: input, shape index: {}]   ;;  %s2731_s1 = inlined_call_operand.vmem [shape: f32[256,72], index: 1, kind: input, shape index: {}]   ;;  %s2732_s2 = inlined_call_operand.vmem [shape: f32[256,1], index: 2, kind: input, shape index: {}]   ;;  %s2733_s3 = inlined_call_operand.vmem [shape: f32[8,256], index: 3, kind: input, shape index: {}]   ;;  %s2734_s4 = inlined_call_operand.vmem [shape: f32[8,1], index: 4, kind: input, shape index: {}]   ;;  %s2735_s5 = inlined_call_operand.hbm [shape: f32[8,512], index: 5, kind: output, shape index: {}]  }
   0x1   :  { %v1840_v0 = vld [vmem:[%s2730_s0 + $0x10] sm:$0xff]  ;;  %v1845_v1 = vld [vmem:[%s2730_s0] sm:$0xff] }
   0x2   :  { %469 = vrot.lane.b32.xlu1 %v1840_v0, %s1796_s22  ;;  %465 = vrot.lane.b32.xlu0 %v1845_v1, %s1796_s22 }
   0x3   :  { %10 = vsyncpa [#allocation4], 0  ;;  %v1852_v2 = vld [vmem:[%s2730_s0 + $0x18] sm:$0xff]  ;;  %v1857_v3 = vld [vmem:[%s2730_s0 + $0x8] sm:$0xff]  ;;  %s1797_s27 = smov 112   ;;  %s1798_s28 = smov 113   ;;  %v21_v7 = vlaneseq }
   0x4   :  { %s1799_s0 = smov 127   ;;  %s1800_s29 = smov 1   ;;  %v1803_v4 = vmov 0.0   ;;  %v1805_v5 = vmov 0   ;;  %v585_v6 = vld [vmem:[%s2732_s2 + $0x78] sm:$0xff]  ;;  %v584_v8 = vld [vmem:[%s2732_s2 + $0x70] sm:$0xff] }
   0x5   :  { %s1801_s30 = smov 15   ;;  %s1802_s6 = smov 16   ;;  %923 = vmatprep.mubr.f32.mxu0 %v1803_v4  ;;  %1180 = vmatprep.mubr.f32.mxu1 %v1803_v4  ;;  %v582_v9 = vld [vmem:[%s2732_s2 + $0x60] sm:$0xff]  ;;  %v1900_v10 = vand.u32 127, %v21_v7  ;;  %v583_v11 = vld [vmem:[%s2732_s2 + $0x68] sm:$0xff]  ;;  %v580_v12 = vld [vmem:[%s2732_s2 + $0x50] sm:$0xff] }
   0x6   :  { %471 = vrot.lane.b32.xlu1 %v1852_v2, %s1796_s22  ;;  %467 = vrot.lane.b32.xlu0 %v1857_v3, %s1796_s22  ;;  %s1804_s7 = smov 17   ;;  %v581_v15 = vld [vmem:[%s2732_s2 + $0x58] sm:$0xff]  ;;  %v578_v16 = vld [vmem:[%s2732_s2 + $0x40] sm:$0xff] }
   0x7   :  { %1772 = vset.pattern.permute.xlu0 %v1805_v5  ;;  %1773 = vset.pattern.permute.xlu1 %v1805_v5  ;;  %v23_v13 = vadd.s32 128, %v1900_v10  ;;  %v1910_v14 = vadd.s32 384, %v1900_v10  ;;  %v1921_v21 = vadd.s32 256, %v1900_v10  ;;  %v579_v22 = vld [vmem:[%s2732_s2 + $0x48] sm:$0xff]  ;;  %v576_v23 = vld [vmem:[%s2732_s2 + $0x30] sm:$0xff]  ;;  %v78_v28 = vand.u32 15, %v1900_v10 }
   0x8   :  { %v577_v30 = vld [vmem:[%s2732_s2 + $0x38] sm:$0xff]  ;;  %v574_v31 = vld [vmem:[%s2732_s2 + $0x20] sm:$0xff]  ;;  %v575_v36 = vld [vmem:[%s2732_s2 + $0x28] sm:$0xff]  ;;  %vm473_vm4 = vcmp.lt.s32.totalorder %v1900_v10, 111  ;;  %vm436_vm9 = vcmp.lt.s32.totalorder %v1900_v10, 112  ;;  %vm383_vm13 = vcmp.lt.s32.totalorder %v1900_v10, 113 }
   0x9   :  { %v37_v17 = vand.u32 255, %v23_v13  ;;  %v85_v18 = vand.u32 15, %v23_v13  ;;  %v51_v19 = vand.u32 255, %v1910_v14  ;;  %v99_v20 = vand.u32 15, %v1910_v14  ;;  %v572_v37 = vld [vmem:[%s2732_s2 + $0x10] sm:$0xff]  ;;  %v573_v40 = vld [vmem:[%s2732_s2 + $0x18] sm:$0xff] }
   0xa   :  { %430 = vrot.lane.b32.xlu1 %v1857_v3, %s1797_s27  ;;  %428 = vrot.lane.b32.xlu0 %v1845_v1, %s1797_s27  ;;  %v92_v29 = vand.u32 15, %v1921_v21  ;;  %v1949_v34 = vadd.s32 1, %v78_v28  ;;  %v570_v45 = vld [vmem:[%s2732_s2] sm:$0xff]  ;;  %v571_v48 = vld [vmem:[%s2732_s2 + $0x8] sm:$0xff]  ;;  %v1994_v59 = vadd.s32 4294967295, %v78_v28 }
   0xb   :  { %v1929_v24 = vadd.s32 1, %v85_v18  ;;  %v1931_v25 = vadd.s32 16, %v37_v17  ;;  %v1933_v26 = vadd.s32 1, %v99_v20  ;;  %v1935_v27 = vadd.s32 16, %v51_v19 }
   0xc   :  { %v1951_v35 = vadd.s32 1, %v92_v29  ;;  %vm261_vm7 = vcmp.lt.s32.totalorder %v1949_v34, 16  ;;  %v1984_v49 = vadd.s32 4294967295, %v85_v18  ;;  %v1986_v52 = vadd.s32 4294967295, %v99_v20 }
   0xd   :  { %vm262_vm0 = vcmp.lt.s32.totalorder %v1929_v24, 16  ;;  %vm397_vm1 = vcmp.lt.s32.totalorder %v1931_v25, 256  ;;  %vm264_vm2 = vcmp.lt.s32.totalorder %v1933_v26, 16  ;;  %vm399_vm3 = vcmp.lt.s32.totalorder %v1935_v27, 256  ;;  %v596_v24 = vld [vmem:[%s2732_s2 + $0xd0] sm:$0xff] }
   0xe   :  { %434 = vrot.lane.b32.xlu1 %v1852_v2, %s1797_s27  ;;  %432 = vrot.lane.b32.xlu0 %v1840_v0, %s1797_s27  ;;  %vm483_vm5 = vmand %vm397_vm1, %vm262_vm0  ;;  %vm263_vm8 = vcmp.lt.s32.totalorder %v1951_v35, 16  ;;  %vm160_vm10 = vcmp.ge.s32.totalorder %v1984_v49, 0  ;;  %vm162_vm11 = vcmp.ge.s32.totalorder %v1986_v52, 0  ;;  %v1996_v60 = vadd.s32 4294967295, %v92_v29  ;;  %v589_v49 = vld [vmem:[%s2732_s2 + $0x98] sm:$0xff]  ;;  %v1503_v52 = vld [vmem:[%s2734_s4] sm:$0xff] }
   0xf   :  { %vm485_vm6 = vmand %vm399_vm3, %vm264_vm2  ;;  %vm159_vm15 = vcmp.ge.s32.totalorder %v1994_v59, 0  ;;  %v30_v19 = vand.u32 255, %v1900_v10  ;;  %v588_v59 = vld [vmem:[%s2732_s2 + $0x90] sm:$0xff] }
  0x10   :  { %vm405_vm12 = vmand %vm397_vm1, %vm160_vm10 }
  0x11   :  { %vm407_vm14 = vmand %vm399_vm3, %vm162_vm11  ;;  %v2033_v27 = vadd.s32 4294967280, %v30_v19  ;;  %v514_v19 = vld [vmem:[%s2731_s1 + $0x60] sm:$0xff] }
  0x12   :  { %377 = vrot.lane.b32.xlu1 %v1857_v3, %s1798_s28  ;;  %375 = vrot.lane.b32.xlu0 %v1845_v1, %s1798_s28 }
  0x16   :  { %381 = vrot.lane.b32.xlu1 %v1852_v2, %s1798_s28  ;;  %379 = vrot.lane.b32.xlu0 %v1840_v0, %s1798_s28 }
  0x1a   :  { %340 = vrot.lane.b32.xlu1 %v1857_v3, %s1799_s0  ;;  %338 = vrot.lane.b32.xlu0 %v1845_v1, %s1799_s0 }
  0x1e   :  { %344 = vrot.lane.b32.xlu1 %v1852_v2, %s1799_s0  ;;  %342 = vrot.lane.b32.xlu0 %v1840_v0, %s1799_s0 }
  0x22   :  { %287 = vrot.lane.b32.xlu1 %v1857_v3, %s1800_s29  ;;  %285 = vrot.lane.b32.xlu0 %v1845_v1, %s1800_s29 }
  0x26   :  { %291 = vrot.lane.b32.xlu1 %v1852_v2, %s1800_s29  ;;  %289 = vrot.lane.b32.xlu0 %v1840_v0, %s1800_s29 }
  0x2a   :  { %238 = vrot.lane.b32.xlu1 %v1857_v3, %s1801_s30  ;;  %236 = vrot.lane.b32.xlu0 %v1845_v1, %s1801_s30 }
  0x2e   :  { %242 = vrot.lane.b32.xlu1 %v1852_v2, %s1801_s30  ;;  %240 = vrot.lane.b32.xlu0 %v1840_v0, %s1801_s30  ;;  %s1806_s30 = smov [#allocation3]  }
  0x32   :  { %193 = vrot.lane.b32.xlu1 %v1857_v3, %s1802_s6  ;;  %191 = vrot.lane.b32.xlu0 %v1845_v1, %s1802_s6 }
  0x36   :  { %197 = vrot.lane.b32.xlu1 %v1852_v2, %s1802_s6  ;;  %195 = vrot.lane.b32.xlu0 %v1840_v0, %s1802_s6  ;;  %s1661_s6 = sshll.u32 %s1806_s30, 4  ;;  %s1662_s6 = int_to_ptr.vmem [resolvable:$true] %s1661_s6 }
  0x37   :  { %p1779_p1 = scmp.lt.s32.totalorder %s1662_s6, %s1662_s6 }
  0x3a   :  { %128 = vrot.lane.b32.xlu1 %v1857_v3, %s1804_s7  ;;  %126 = vrot.lane.b32.xlu0 %v1845_v1, %s1804_s7 }
  0x3e   :  { %132 = vrot.lane.b32.xlu1 %v1852_v2, %s1804_s7  ;;  %130 = vrot.lane.b32.xlu0 %v1840_v0, %s1804_s7 }
  0x42   :  { %679 = vperm.xlu0 %1772, %v585_v6   ;;  %674 = vperm.xlu1 %1773, %v584_v8  }
  0x46   :  { %664 = vperm.xlu0 %1772, %v582_v9   ;;  %669 = vperm.xlu1 %1773, %v583_v11  }
  0x4a   :  { %654 = vperm.xlu0 %1772, %v580_v12   ;;  %659 = vperm.xlu1 %1773, %v581_v15  }
  0x4e   :  { %644 = vperm.xlu0 %1772, %v578_v16   ;;  %649 = vperm.xlu1 %1773, %v579_v22   ;;  %v44_v22 = vand.u32 255, %v1921_v21 }
  0x50   :  { %v2047_v28 = vadd.s32 4294967280, %v44_v22  ;;  %v516_v22 = vld [vmem:[%s2731_s1 + $0x70] sm:$0xff] }
  0x52   :  { %634 = vperm.xlu0 %1772, %v576_v23   ;;  %639 = vperm.xlu1 %1773, %v577_v30  }
  0x56   :  { %624 = vperm.xlu0 %1772, %v574_v31   ;;  %629 = vperm.xlu1 %1773, %v575_v36   ;;  %v599_v31 = vld [vmem:[%s2732_s2 + $0xe8] sm:$0xff] }
  0x5a   :  { %614 = vperm.xlu0 %1772, %v572_v37   ;;  %619 = vperm.xlu1 %1773, %v573_v40  }
  0x5e   :  { %604 = vperm.xlu0 %1772, %v570_v45   ;;  %609 = vperm.xlu1 %1773, %v571_v48  }
  0x74   :  { %v470_v32 = vpop.permute.xlu1 %469  ;;  %v466_v33 = vpop.permute.xlu0 %465 }
  0x78   :  { %v472_v38 = vpop.permute.xlu1 %471  ;;  %v468_v39 = vpop.permute.xlu0 %467 }
  0x79   :  { %v475_v41 = vsel %vm473_vm4, %v468_v39, %v470_v32  ;;  %v477_v42 = vsel %vm473_vm4, %v472_v38, %v466_v33  ;;  %v476_v43 = vsel %vm473_vm4, %v466_v33, %v468_v39  ;;  %v474_v44 = vsel %vm473_vm4, %v470_v32, %v472_v38  ;;  %v598_v32 = vld [vmem:[%s2732_s2 + $0xe0] sm:$0xff]  ;;  %v597_v38 = vld [vmem:[%s2732_s2 + $0xd8] sm:$0xff] }
  0x7a   :  { %1733 = vmatprep.subr.msk.mxu0 %vm483_vm5, %v475_v41  ;;  %1747 = vmatprep.subr.msk.mxu1 %vm485_vm6, %v477_v42  ;;  %vm161_vm4 = vcmp.ge.s32.totalorder %v1996_v60, 0  ;;  %vm244_vm5 = vcmp.lt.s32.totalorder %v1900_v10, 15  ;;  %vm143_vm6 = vcmp.ge.s32.totalorder %v2033_v27, 0  ;;  %v595_v42 = vld [vmem:[%s2732_s2 + $0xc8] sm:$0xff] }
  0x7b   :  { %1734 = vmatpush1.msk.msra.mxu0 %vm261_vm7, %v476_v43  ;;  %1748 = vmatpush1.msk.msra.mxu1 %vm263_vm8, %v474_v44  ;;  %v594_v43 = vld [vmem:[%s2732_s2 + $0xc0] sm:$0xff]  ;;  %v519_v27 = vld [vmem:[%s2731_s1 + $0x88] sm:$0xff] }
  0x7c   :  { %v431_v46 = vpop.permute.xlu1 %430  ;;  %v429_v47 = vpop.permute.xlu0 %428 }
  0x7d   :  { %v439_v56 = vsel %vm436_vm9, %v429_v47, %v431_v46 }
  0x80   :  { %v435_v50 = vpop.permute.xlu1 %434  ;;  %v433_v51 = vpop.permute.xlu0 %432 }
  0x81   :  { %v440_v53 = vsel %vm436_vm9, %v435_v50, %v429_v47  ;;  %v438_v54 = vsel %vm436_vm9, %v431_v46, %v433_v51  ;;  %v437_v55 = vsel %vm436_vm9, %v433_v51, %v435_v50  ;;  %vm145_vm9 = vcmp.ge.s32.totalorder %v2047_v28, 0  ;;  %v593_v46 = vld [vmem:[%s2732_s2 + $0xb8] sm:$0xff]  ;;  %v592_v47 = vld [vmem:[%s2732_s2 + $0xb0] sm:$0xff] }
  0x82   :  { %1735 = vmatprep.subr.msk.mxu0 %vm397_vm1, %v438_v54  ;;  %1749 = vmatprep.subr.msk.mxu1 %vm399_vm3, %v440_v53  ;;  %vm346_vm1 = vcmp.lt.s32.totalorder %v1900_v10, 127  ;;  %vm293_vm3 = vcmp.lt.s32.totalorder %v1900_v10, 1  ;;  %v525_v28 = vld [vmem:[%s2731_s1 + $0xb8] sm:$0xff] }
  0x83   :  { %876 = vmatpush1.msra.mxu0 %v439_v56  ;;  %1133 = vmatpush1.msra.mxu1 %v437_v55  ;;  %v591_v55 = vld [vmem:[%s2732_s2 + $0xa8] sm:$0xff]  ;;  %v590_v56 = vld [vmem:[%s2732_s2 + $0xa0] sm:$0xff] }
  0x84   :  { %v378_v57 = vpop.permute.xlu1 %377  ;;  %v376_v58 = vpop.permute.xlu0 %375 }
  0x85   :  { %v386_v7 = vsel %vm383_vm13, %v376_v58, %v378_v57 }
  0x88   :  { %v382_v61 = vpop.permute.xlu1 %381  ;;  %v380_v62 = vpop.permute.xlu0 %379 }
  0x89   :  { %v387_v63 = vsel %vm383_vm13, %v382_v61, %v376_v58  ;;  %v384_v5 = vsel %vm383_vm13, %v380_v62, %v382_v61  ;;  %v385_v6 = vsel %vm383_vm13, %v378_v57, %v380_v62  ;;  %vm267_vm13 = vmand %vm145_vm9, %vm263_vm8  ;;  %v502_v58 = vld [vmem:[%s2731_s1] sm:$0xff] }
  0x8a   :  { %1736 = vmatprep.subr.msk.mxu0 %vm405_vm12, %v385_v6  ;;  %1750 = vmatprep.subr.msk.mxu1 %vm407_vm14, %v387_v63  ;;  %vm265_vm12 = vmand %vm143_vm6, %vm261_vm7  ;;  %v587_v6 = vld [vmem:[%s2732_s2 + $0x88] sm:$0xff] }
  0x8b   :  { %1737 = vmatpush1.msk.msra.mxu0 %vm159_vm15, %v386_v7  ;;  %1751 = vmatpush1.msk.msra.mxu1 %vm161_vm4, %v384_v5  ;;  %vm165_vm14 = vmand %vm145_vm9, %vm161_vm4  ;;  %v586_v7 = vld [vmem:[%s2732_s2 + $0x80] sm:$0xff] }
  0x8c   :  { %v341_v8 = vpop.permute.xlu1 %340  ;;  %v339_v9 = vpop.permute.xlu0 %338 }
  0x8d   :  { %v349_v16 = vsel %vm346_vm1, %v339_v9, %v341_v8 }
  0x90   :  { %v345_v11 = vpop.permute.xlu1 %344  ;;  %v343_v12 = vpop.permute.xlu0 %342 }
  0x91   :  { %v350_v13 = vsel %vm346_vm1, %v345_v11, %v339_v9  ;;  %v347_v14 = vsel %vm346_vm1, %v343_v12, %v345_v11  ;;  %v348_v15 = vsel %vm346_vm1, %v341_v8, %v343_v12  ;;  %v504_v8 = vld [vmem:[%s2731_s1 + $0x10] sm:$0xff]  ;;  %v505_v9 = vld [vmem:[%s2731_s1 + $0x18] sm:$0xff]  ;;  %v506_v11 = vld [vmem:[%s2731_s1 + $0x20] sm:$0xff] }
  0x92   :  { %1738 = vmatprep.subr.msk.mxu0 %vm262_vm0, %v348_v15  ;;  %1752 = vmatprep.subr.msk.mxu1 %vm264_vm2, %v350_v13  ;;  %v507_v12 = vld [vmem:[%s2731_s1 + $0x28] sm:$0xff]  ;;  %v508_v13 = vld [vmem:[%s2731_s1 + $0x30] sm:$0xff]  ;;  %v510_v15 = vld [vmem:[%s2731_s1 + $0x40] sm:$0xff] }
  0x93   :  { %1739 = vmatpush1.msk.msra.mxu0 %vm261_vm7, %v349_v16  ;;  %1753 = vmatpush1.msk.msra.mxu1 %vm263_vm8, %v347_v14  ;;  %vm163_vm7 = vmand %vm143_vm6, %vm159_vm15  ;;  %vm762_vm8 = vcmask 588800   ;;  %v509_v14 = vld [vmem:[%s2731_s1 + $0x38] sm:$0xff]  ;;  %v511_v16 = vld [vmem:[%s2731_s1 + $0x48] sm:$0xff] }
  0x94   :  { %v288_v17 = vpop.permute.xlu1 %287  ;;  %v286_v18 = vpop.permute.xlu0 %285  ;;  %881 = vmatprep.subr.mxu0 %v1857_v3  ;;  %1138 = vmatprep.subr.mxu1 %v1852_v2  ;;  %v601_v2 = vld [vmem:[%s2732_s2 + $0xf8] sm:$0xff]  ;;  %v600_v3 = vld [vmem:[%s2732_s2 + $0xf0] sm:$0xff] }
  0x95   :  { %v296_v20 = vsel %vm293_vm3, %v286_v18, %v288_v17  ;;  %882 = vmatpush1.msra.mxu0 %v1845_v1  ;;  %1139 = vmatpush1.msra.mxu1 %v1840_v0 }
  0x96   :  { %1740 = vmatprep.subr.msk.mxu0 %vm160_vm10, %v296_v20  ;;  %759 = vperm.xlu1 %1773, %v601_v2   ;;  %v515_v20 = vld [vmem:[%s2731_s1 + $0x68] sm:$0xff]  ;;  %v520_v2 = vld [vmem:[%s2731_s1 + $0x90] sm:$0xff] }
  0x97   :  { %754 = vperm.xlu0 %1772, %v600_v3   ;;  %v521_v3 = vld [vmem:[%s2731_s1 + $0x98] sm:$0xff] }
  0x98   :  { %v292_v23 = vpop.permute.xlu1 %291  ;;  %v290_v25 = vpop.permute.xlu0 %289 }
  0x99   :  { %v297_v0 = vsel %vm293_vm3, %v292_v23, %v286_v18  ;;  %v294_v1 = vsel %vm293_vm3, %v290_v25, %v292_v23  ;;  %v295_v21 = vsel %vm293_vm3, %v288_v17, %v290_v25  ;;  %v512_v17 = vld [vmem:[%s2731_s1 + $0x50] sm:$0xff]  ;;  %v513_v18 = vld [vmem:[%s2731_s1 + $0x58] sm:$0xff]  ;;  %v518_v25 = vld [vmem:[%s2731_s1 + $0x80] sm:$0xff] }
  0x9a   :  { %1741 = vmatpush1.msk.msra.mxu0 %vm159_vm15, %v297_v0  ;;  %1754 = vmatprep.subr.msk.mxu1 %vm162_vm11, %v294_v1  ;;  %v517_v23 = vld [vmem:[%s2731_s1 + $0x78] sm:$0xff]  ;;  %v522_v0 = vld [vmem:[%s2731_s1 + $0xa0] sm:$0xff]  ;;  %v523_v1 = vld [vmem:[%s2731_s1 + $0xa8] sm:$0xff] }
  0x9b   :  { %1755 = vmatpush1.msk.msra.mxu1 %vm161_vm4, %v295_v21  ;;  %749 = vperm.xlu1 %1773, %v599_v31   ;;  %v524_v21 = vld [vmem:[%s2731_s1 + $0xb0] sm:$0xff] }
  0x9c   :  { %v239_v29 = vpop.permute.xlu1 %238  ;;  %v237_v30 = vpop.permute.xlu0 %236  ;;  %744 = vperm.xlu0 %1772, %v598_v32   ;;  %v528_v31 = vld [vmem:[%s2731_s1 + $0xd0] sm:$0xff]  ;;  %v529_v32 = vld [vmem:[%s2731_s1 + $0xd8] sm:$0xff] }
  0x9d   :  { %v247_v33 = vsel %vm244_vm5, %v237_v30, %v239_v29 }
  0x9e   :  { %1742 = vmatprep.subr.msk.mxu0 %vm262_vm0, %v247_v33  ;;  %vm199_vm0 = vcmp.lt.s32.totalorder %v1900_v10, 16  ;;  %v530_v33 = vld [vmem:[%s2731_s1 + $0xe0] sm:$0xff] }
  0x9f   :  { %739 = vperm.xlu1 %1773, %v597_v38   ;;  %v533_v38 = vld [vmem:[%s2731_s1 + $0xf8] sm:$0xff] }
  0xa0   :  { %v243_v36 = vpop.permute.xlu1 %242  ;;  %v241_v37 = vpop.permute.xlu0 %240  ;;  %734 = vperm.xlu0 %1772, %v596_v24  }
  0xa1   :  { %v248_v34 = vsel %vm244_vm5, %v243_v36, %v237_v30  ;;  %v245_v39 = vsel %vm244_vm5, %v241_v37, %v243_v36  ;;  %v246_v35 = vsel %vm244_vm5, %v239_v29, %v241_v37  ;;  %v526_v29 = vld [vmem:[%s2731_s1 + $0xc0] sm:$0xff]  ;;  %v527_v30 = vld [vmem:[%s2731_s1 + $0xc8] sm:$0xff]  ;;  %v532_v37 = vld [vmem:[%s2731_s1 + $0xf0] sm:$0xff] }
  0xa2   :  { %1743 = vmatpush1.msk.msra.mxu0 %vm265_vm12, %v248_v34  ;;  %1756 = vmatprep.subr.msk.mxu1 %vm264_vm2, %v245_v39  ;;  %vm134_vm2 = vcmp.lt.s32.totalorder %v1900_v10, 17  ;;  %v503_v10 = vld [vmem:[%s2731_s1 + $0x8] sm:$0xff] }
  0xa3   :  { %1757 = vmatpush1.msk.msra.mxu1 %vm267_vm13, %v246_v35  ;;  %729 = vperm.xlu1 %1773, %v595_v42   ;;  %v531_v36 = vld [vmem:[%s2731_s1 + $0xe8] sm:$0xff] }
  0xa4   :  { %v194_v40 = vpop.permute.xlu1 %193  ;;  %v192_v41 = vpop.permute.xlu0 %191  ;;  %724 = vperm.xlu0 %1772, %v594_v43  }
  0xa5   :  { %v202_v44 = vsel %vm199_vm0, %v192_v41, %v194_v40 }
  0xa6   :  { %887 = vmatprep.subr.mxu0 %v202_v44 }
  0xa7   :  { %719 = vperm.xlu1 %1773, %v593_v46  }
  0xa8   :  { %v198_v26 = vpop.permute.xlu1 %197  ;;  %v196_v45 = vpop.permute.xlu0 %195  ;;  %714 = vperm.xlu0 %1772, %v592_v47  }
  0xa9   :  { %v203_v48 = vsel %vm199_vm0, %v198_v26, %v192_v41  ;;  %v201_v50 = vsel %vm199_vm0, %v194_v40, %v196_v45  ;;  %v200_v51 = vsel %vm199_vm0, %v196_v45, %v198_v26 }
  0xaa   :  { %1744 = vmatpush1.msk.msra.mxu0 %vm143_vm6, %v203_v48  ;;  %1144 = vmatprep.subr.mxu1 %v200_v51 }
  0xab   :  { %1758 = vmatpush1.msk.msra.mxu1 %vm145_vm9, %v201_v50  ;;  %709 = vperm.xlu1 %1773, %v591_v55  }
  0xac   :  { %v129_v53 = vpop.permute.xlu1 %128  ;;  %v127_v54 = vpop.permute.xlu0 %126  ;;  %704 = vperm.xlu0 %1772, %v590_v56  }
  0xad   :  { %v137_v57 = vsel %vm134_vm2, %v127_v54, %v129_v53 }
  0xae   :  { %1745 = vmatprep.subr.msk.mxu0 %vm160_vm10, %v137_v57 }
  0xaf   :  { %699 = vperm.xlu1 %1773, %v589_v49  }
  0xb0   :  { %v133_v61 = vpop.permute.xlu1 %132  ;;  %v131_v62 = vpop.permute.xlu0 %130  ;;  %694 = vperm.xlu0 %1772, %v588_v59  }
  0xb1   :  { %v138_v63 = vsel %vm134_vm2, %v133_v61, %v127_v54  ;;  %v135_v5 = vsel %vm134_vm2, %v131_v62, %v133_v61  ;;  %v136_v60 = vsel %vm134_vm2, %v129_v53, %v131_v62 }
  0xb2   :  { %1746 = vmatpush1.msk.msra.mxu0 %vm163_vm7, %v138_v63  ;;  %1759 = vmatprep.subr.msk.mxu1 %vm162_vm11, %v135_v5 }
  0xb3   :  { %1669 = vmatmul.mubr.msk.f32.vlgmr.msra.gmra.mxu0 %vm762_vm8, %v502_v58  ;;  %1760 = vmatpush1.msk.msra.mxu1 %vm165_vm14, %v136_v60 }
  0xb4   :  { %1701 = vmatmul.mubr.msk.f32.vlgmr.msra.gmra.mxu1 %vm762_vm8, %v502_v58  ;;  %929 = vmatprep.mubr.f32.mxu0 %v1803_v4 }
  0xb5   :  { %1186 = vmatprep.mubr.f32.mxu1 %v1803_v4  ;;  %689 = vperm.xlu1 %1773, %v587_v6  }
  0xb6   :  { %684 = vperm.xlu0 %1772, %v586_v7  }
  0xb7   :  { %1670 = vmatmul.mubr.msk.f32.gmra.mxu0 %vm762_vm8, %v503_v10 }
  0xb8   :  { %1702 = vmatmul.mubr.msk.f32.gmra.mxu1 %vm762_vm8, %v503_v10  ;;  %935 = vmatprep.mubr.f32.mxu0 %v1803_v4 }
  0xb9   :  { %1192 = vmatprep.mubr.f32.mxu1 %v1803_v4  ;;  %1506 = vperm.xlu1 %1773, %v1503_v52  }
  0xbb   :  { %1671 = vmatmul.mubr.msk.f32.gmra.mxu0 %vm762_vm8, %v504_v8 }
  0xbc   :  { %1703 = vmatmul.mubr.msk.f32.gmra.mxu1 %vm762_vm8, %v504_v8  ;;  %941 = vmatprep.mubr.f32.mxu0 %v1803_v4  ;;  %v1502_v8 = vld [vmem:[%s2733_s3 + $0x8] sm:$0xff] }
  0xbd   :  { %1198 = vmatprep.mubr.f32.mxu1 %v1803_v4 }
  0xbf   :  { %1672 = vmatmul.mubr.msk.f32.gmra.mxu0 %vm762_vm8, %v505_v9 }
  0xc0   :  { %1704 = vmatmul.mubr.msk.f32.gmra.mxu1 %vm762_vm8, %v505_v9  ;;  %947 = vmatprep.mubr.f32.mxu0 %v1803_v4 }
  0xc1   :  { %1204 = vmatprep.mubr.f32.mxu1 %v1803_v4 }
  0xc3   :  { %1673 = vmatmul.mubr.msk.f32.gmra.mxu0 %vm762_vm8, %v506_v11 }
  0xc4   :  { %1705 = vmatmul.mubr.msk.f32.gmra.mxu1 %vm762_vm8, %v506_v11  ;;  %953 = vmatprep.mubr.f32.mxu0 %v1803_v4 }
  0xc5   :  { %1210 = vmatprep.mubr.f32.mxu1 %v1803_v4 }
  0xc7   :  { %1674 = vmatmul.mubr.msk.f32.gmra.mxu0 %vm762_vm8, %v507_v12 }
  0xc8   :  { %1706 = vmatmul.mubr.msk.f32.gmra.mxu1 %vm762_vm8, %v507_v12  ;;  %959 = vmatprep.mubr.f32.mxu0 %v1803_v4 }
  0xc9   :  { %1216 = vmatprep.mubr.f32.mxu1 %v1803_v4 }
  0xcb   :  { %1675 = vmatmul.mubr.msk.f32.gmra.mxu0 %vm762_vm8, %v508_v13 }
  0xcc   :  { %1707 = vmatmul.mubr.msk.f32.gmra.mxu1 %vm762_vm8, %v508_v13  ;;  %965 = vmatprep.mubr.f32.mxu0 %v1803_v4 }
  0xcd   :  { %1222 = vmatprep.mubr.f32.mxu1 %v1803_v4 }
  0xcf   :  { %1676 = vmatmul.mubr.msk.f32.gmra.mxu0 %vm762_vm8, %v509_v14 }
  0xd0   :  { %1708 = vmatmul.mubr.msk.f32.gmra.mxu1 %vm762_vm8, %v509_v14  ;;  %971 = vmatprep.mubr.f32.mxu0 %v1803_v4 }
  0xd1   :  { %1228 = vmatprep.mubr.f32.mxu1 %v1803_v4 }
  0xd3   :  { %1677 = vmatmul.mubr.msk.f32.gmra.mxu0 %vm762_vm8, %v510_v15 }
  0xd4   :  { %1709 = vmatmul.mubr.msk.f32.gmra.mxu1 %vm762_vm8, %v510_v15  ;;  %977 = vmatprep.mubr.f32.mxu0 %v1803_v4 }
  0xd5   :  { %1234 = vmatprep.mubr.f32.mxu1 %v1803_v4 }
  0xd7   :  { %1678 = vmatmul.mubr.msk.f32.gmra.mxu0 %vm762_vm8, %v511_v16 }
  0xd8   :  { %1710 = vmatmul.mubr.msk.f32.gmra.mxu1 %vm762_vm8, %v511_v16  ;;  %983 = vmatprep.mubr.f32.mxu0 %v1803_v4 }
  0xd9   :  { %1240 = vmatprep.mubr.f32.mxu1 %v1803_v4 }
  0xdb   :  { %1679 = vmatmul.mubr.msk.f32.gmra.mxu0 %vm762_vm8, %v512_v17 }
  0xdc   :  { %1711 = vmatmul.mubr.msk.f32.gmra.mxu1 %vm762_vm8, %v512_v17  ;;  %989 = vmatprep.mubr.f32.mxu0 %v1803_v4 }
  0xdd   :  { %1246 = vmatprep.mubr.f32.mxu1 %v1803_v4 }
  0xdf   :  { %1680 = vmatmul.mubr.msk.f32.gmra.mxu0 %vm762_vm8, %v513_v18 }
  0xe0   :  { %1712 = vmatmul.mubr.msk.f32.gmra.mxu1 %vm762_vm8, %v513_v18  ;;  %995 = vmatprep.mubr.f32.mxu0 %v1803_v4 }
  0xe1   :  { %1252 = vmatprep.mubr.f32.mxu1 %v1803_v4 }
  0xe3   :  { %1681 = vmatmul.mubr.msk.f32.gmra.mxu0 %vm762_vm8, %v514_v19 }
  0xe4   :  { %1713 = vmatmul.mubr.msk.f32.gmra.mxu1 %vm762_vm8, %v514_v19  ;;  %1001 = vmatprep.mubr.f32.mxu0 %v1803_v4 }
  0xe5   :  { %1258 = vmatprep.mubr.f32.mxu1 %v1803_v4 }
  0xe7   :  { %1682 = vmatmul.mubr.msk.f32.gmra.mxu0 %vm762_vm8, %v515_v20 }
  0xe8   :  { %1714 = vmatmul.mubr.msk.f32.gmra.mxu1 %vm762_vm8, %v515_v20  ;;  %1007 = vmatprep.mubr.f32.mxu0 %v1803_v4  ;;  %v675_v20 = vpop.permute.xlu1 %674 }
  0xe9   :  { %1264 = vmatprep.mubr.f32.mxu1 %v1803_v4 }
  0xeb   :  { %1683 = vmatmul.mubr.msk.f32.gmra.mxu0 %vm762_vm8, %v516_v22 }
  0xec   :  { %1715 = vmatmul.mubr.msk.f32.gmra.mxu1 %vm762_vm8, %v516_v22  ;;  %1013 = vmatprep.mubr.f32.mxu0 %v1803_v4 }
  0xed   :  { %1270 = vmatprep.mubr.f32.mxu1 %v1803_v4 }
  0xef   :  { %1684 = vmatmul.mubr.msk.f32.gmra.mxu0 %vm762_vm8, %v517_v23 }
  0xf0   :  { %1716 = vmatmul.mubr.msk.f32.gmra.mxu1 %vm762_vm8, %v517_v23  ;;  %1019 = vmatprep.mubr.f32.mxu0 %v1803_v4 }
  0xf1   :  { %1276 = vmatprep.mubr.f32.mxu1 %v1803_v4 }
  0xf3   :  { %1685 = vmatmul.mubr.msk.f32.gmra.mxu0 %vm762_vm8, %v518_v25 }
  0xf4   :  { %1717 = vmatmul.mubr.msk.f32.gmra.mxu1 %vm762_vm8, %v518_v25  ;;  %1025 = vmatprep.mubr.f32.mxu0 %v1803_v4  ;;  %v680_v25 = vpop.permute.xlu0 %679 }
  0xf5   :  { %1282 = vmatprep.mubr.f32.mxu1 %v1803_v4 }
  0xf7   :  { %1686 = vmatmul.mubr.msk.f32.gmra.mxu0 %vm762_vm8, %v519_v27 }
  0xf8   :  { %1718 = vmatmul.mubr.msk.f32.gmra.mxu1 %vm762_vm8, %v519_v27  ;;  %1031 = vmatprep.mubr.f32.mxu0 %v1803_v4 }
  0xf9   :  { %1288 = vmatprep.mubr.f32.mxu1 %v1803_v4 }
  0xfb   :  { %1687 = vmatmul.mubr.msk.f32.gmra.mxu0 %vm762_vm8, %v520_v2 }
  0xfc   :  { %1719 = vmatmul.mubr.msk.f32.gmra.mxu1 %vm762_vm8, %v520_v2  ;;  %1037 = vmatprep.mubr.f32.mxu0 %v1803_v4 }
  0xfd   :  { %1294 = vmatprep.mubr.f32.mxu1 %v1803_v4 }
  0xff   :  { %1688 = vmatmul.mubr.msk.f32.gmra.mxu0 %vm762_vm8, %v521_v3 }
 0x100   :  { %1720 = vmatmul.mubr.msk.f32.gmra.mxu1 %vm762_vm8, %v521_v3  ;;  %1043 = vmatprep.mubr.f32.mxu0 %v1803_v4 }
 0x101   :  { %1300 = vmatprep.mubr.f32.mxu1 %v1803_v4 }
 0x103   :  { %1689 = vmatmul.mubr.msk.f32.gmra.mxu0 %vm762_vm8, %v522_v0 }
 0x104   :  { %1721 = vmatmul.mubr.msk.f32.gmra.mxu1 %vm762_vm8, %v522_v0  ;;  %1049 = vmatprep.mubr.f32.mxu0 %v1803_v4 }
 0x105   :  { %1306 = vmatprep.mubr.f32.mxu1 %v1803_v4 }
 0x107   :  { %1690 = vmatmul.mubr.msk.f32.gmra.mxu0 %vm762_vm8, %v523_v1 }
 0x108   :  { %1722 = vmatmul.mubr.msk.f32.gmra.mxu1 %vm762_vm8, %v523_v1  ;;  %1055 = vmatprep.mubr.f32.mxu0 %v1803_v4  ;;  %v670_v1 = vpop.permute.xlu1 %669 }
 0x109   :  { %1312 = vmatprep.mubr.f32.mxu1 %v1803_v4 }
 0x10b   :  { %1691 = vmatmul.mubr.msk.f32.gmra.mxu0 %vm762_vm8, %v524_v21 }
 0x10c   :  { %1723 = vmatmul.mubr.msk.f32.gmra.mxu1 %vm762_vm8, %v524_v21  ;;  %1061 = vmatprep.mubr.f32.mxu0 %v1803_v4 }
 0x10d   :  { %1318 = vmatprep.mubr.f32.mxu1 %v1803_v4 }
 0x10f   :  { %1692 = vmatmul.mubr.msk.f32.gmra.mxu0 %vm762_vm8, %v525_v28 }
 0x110   :  { %1724 = vmatmul.mubr.msk.f32.gmra.mxu1 %vm762_vm8, %v525_v28  ;;  %1067 = vmatprep.mubr.f32.mxu0 %v1803_v4 }
 0x111   :  { %1324 = vmatprep.mubr.f32.mxu1 %v1803_v4 }
 0x113   :  { %1693 = vmatmul.mubr.msk.f32.gmra.mxu0 %vm762_vm8, %v526_v29 }
 0x114   :  { %1725 = vmatmul.mubr.msk.f32.gmra.mxu1 %vm762_vm8, %v526_v29  ;;  %1073 = vmatprep.mubr.f32.mxu0 %v1803_v4  ;;  %v665_v29 = vpop.permute.xlu0 %664 }
 0x115   :  { %1330 = vmatprep.mubr.f32.mxu1 %v1803_v4 }
 0x117   :  { %1694 = vmatmul.mubr.msk.f32.gmra.mxu0 %vm762_vm8, %v527_v30 }
 0x118   :  { %1726 = vmatmul.mubr.msk.f32.gmra.mxu1 %vm762_vm8, %v527_v30  ;;  %1079 = vmatprep.mubr.f32.mxu0 %v1803_v4 }
 0x119   :  { %1336 = vmatprep.mubr.f32.mxu1 %v1803_v4 }
 0x11b   :  { %1695 = vmatmul.mubr.msk.f32.gmra.mxu0 %vm762_vm8, %v528_v31 }
 0x11c   :  { %1727 = vmatmul.mubr.msk.f32.gmra.mxu1 %vm762_vm8, %v528_v31  ;;  %1085 = vmatprep.mubr.f32.mxu0 %v1803_v4 }
 0x11d   :  { %1342 = vmatprep.mubr.f32.mxu1 %v1803_v4 }
 0x11f   :  { %1696 = vmatmul.mubr.msk.f32.gmra.mxu0 %vm762_vm8, %v529_v32 }
 0x120   :  { %1728 = vmatmul.mubr.msk.f32.gmra.mxu1 %vm762_vm8, %v529_v32  ;;  %1091 = vmatprep.mubr.f32.mxu0 %v1803_v4 }
 0x121   :  { %1348 = vmatprep.mubr.f32.mxu1 %v1803_v4 }
 0x123   :  { %1697 = vmatmul.mubr.msk.f32.gmra.mxu0 %vm762_vm8, %v530_v33 }
 0x124   :  { %1729 = vmatmul.mubr.msk.f32.gmra.mxu1 %vm762_vm8, %v530_v33  ;;  %1097 = vmatprep.mubr.f32.mxu0 %v1803_v4 }
 0x125   :  { %1354 = vmatprep.mubr.f32.mxu1 %v1803_v4 }
 0x127   :  { %1698 = vmatmul.mubr.msk.f32.gmra.mxu0 %vm762_vm8, %v531_v36 }
 0x128   :  { %1730 = vmatmul.mubr.msk.f32.gmra.mxu1 %vm762_vm8, %v531_v36  ;;  %1103 = vmatprep.mubr.f32.mxu0 %v1803_v4  ;;  %v660_v36 = vpop.permute.xlu1 %659 }
 0x129   :  { %1360 = vmatprep.mubr.f32.mxu1 %v1803_v4 }
 0x12b   :  { %1699 = vmatmul.mubr.msk.f32.gmra.mxu0 %vm762_vm8, %v532_v37 }
 0x12c   :  { %1731 = vmatmul.mubr.msk.f32.gmra.mxu1 %vm762_vm8, %v532_v37  ;;  %1109 = vmatprep.mubr.f32.mxu0 %v1803_v4 }
 0x12d   :  { %1366 = vmatprep.mubr.f32.mxu1 %v1803_v4 }
 0x12f   :  { %1700 = vmatmul.mubr.msk.f32.gmra.mxu0 %vm762_vm8, %v533_v38 }
 0x130   :  { %1732 = vmatmul.mubr.msk.f32.gmra.mxu1 %vm762_vm8, %v533_v38  ;;  %1573 = vmatprep.mubr.f32.mxu0 %v1502_v8 }
 0x131   :  { %1644 = vmatprep.mubr.f32.mxu1 %v1502_v8  ;;  %v2476_v8 = vpop.permute.xlu0 %654 }
 0x173   :  { %v2379_v24 = vpop.f32.mrf.mxu0 }
 0x174   :  { %2736 = vst [vmem:[#allocation6_spill] sm:$0xff] %v2379_v24  ;;  %v2381_v34 = vpop.f32.mrf.mxu1 }
 0x175   :  { %2737 = vst [vmem:[#allocation7_spill] sm:$0xff] %v2381_v34  ;;  %v2383_v39 = vpop.f32.mrf.mxu0 }
 0x176   :  { %2738 = vst [vmem:[#allocation8_spill] sm:$0xff] %v2383_v39  ;;  %v2385_v35 = vpop.f32.mrf.mxu1  ;;  %v2478_v39 = vpop.permute.xlu1 %649 }
 0x177   :  { %2739 = vst [vmem:[#allocation9_spill] sm:$0xff] %v2385_v35  ;;  %v2387_v40 = vpop.f32.mrf.mxu0 }
 0x178   :  { %2740 = vst [vmem:[#allocation10_spill] sm:$0xff] %v2387_v40  ;;  %v2389_v41 = vpop.f32.mrf.mxu1 }
 0x179   :  { %2741 = vst [vmem:[#allocation11_spill] sm:$0xff] %v2389_v41  ;;  %v2391_v42 = vpop.f32.mrf.mxu0 }
 0x17a   :  { %2742 = vst [vmem:[#allocation12_spill] sm:$0xff] %v2391_v42  ;;  %v2393_v43 = vpop.f32.mrf.mxu1 }
 0x17b   :  { %2743 = vst [vmem:[#allocation13_spill] sm:$0xff] %v2393_v43  ;;  %v2395_v4 = vpop.f32.mrf.mxu0 }
 0x17c   :  { %2744 = vst [vmem:[#allocation14_spill] sm:$0xff] %v2395_v4  ;;  %v2397_v44 = vpop.f32.mrf.mxu1 }
 0x17d   :  { %2745 = vst [vmem:[#allocation15_spill] sm:$0xff] %v2397_v44  ;;  %v2399_v26 = vpop.f32.mrf.mxu0 }
 0x17e   :  { %2746 = vst [vmem:[#allocation16_spill] sm:$0xff] %v2399_v26  ;;  %v2401_v45 = vpop.f32.mrf.mxu1 }
 0x17f   :  { %2747 = vst [vmem:[#allocation17_spill] sm:$0xff] %v2401_v45  ;;  %v2403_v46 = vpop.f32.mrf.mxu0 }
 0x180   :  { %2748 = vst [vmem:[#allocation18_spill] sm:$0xff] %v2403_v46  ;;  %v2405_v47 = vpop.f32.mrf.mxu1 }
 0x181   :  { %2749 = vst [vmem:[#allocation19_spill] sm:$0xff] %v2405_v47  ;;  %v2407_v48 = vpop.f32.mrf.mxu0  ;;  %v2480_v47 = vpop.permute.xlu0 %644 }
 0x182   :  { %2750 = vst [vmem:[#allocation20_spill] sm:$0xff] %v2407_v48  ;;  %v2409_v50 = vpop.f32.mrf.mxu1 }
 0x183   :  { %2751 = vst [vmem:[#allocation21_spill] sm:$0xff] %v2409_v50  ;;  %v2411_v51 = vpop.f32.mrf.mxu0 }
 0x184   :  { %2752 = vst [vmem:[#allocation22_spill] sm:$0xff] %v2411_v51  ;;  %v2413_v53 = vpop.f32.mrf.mxu1 }
 0x185   :  { %2753 = vst [vmem:[#allocation23_spill] sm:$0xff] %v2413_v53  ;;  %v2415_v54 = vpop.f32.mrf.mxu0 }
 0x186   :  { %2754 = vst [vmem:[#allocation24_spill] sm:$0xff] %v2415_v54  ;;  %v2417_v55 = vpop.f32.mrf.mxu1 }
 0x187   :  { %2755 = vst [vmem:[#allocation25_spill] sm:$0xff] %v2417_v55  ;;  %v2419_v56 = vpop.f32.mrf.mxu0 }
 0x188   :  { %2756 = vst [vmem:[#allocation26_spill] sm:$0xff] %v2419_v56  ;;  %v2421_v57 = vpop.f32.mrf.mxu1 }
 0x189   :  { %2757 = vst [vmem:[#allocation27_spill] sm:$0xff] %v2421_v57  ;;  %v2423_v58 = vpop.f32.mrf.mxu0 }
 0x18a   :  { %2758 = vst [vmem:[#allocation28_spill] sm:$0xff] %v2423_v58  ;;  %v2425_v61 = vpop.f32.mrf.mxu1 }
 0x18b   :  { %2759 = vst [vmem:[#allocation29_spill] sm:$0xff] %v2425_v61  ;;  %v2427_v62 = vpop.f32.mrf.mxu0 }
 0x18c   :  { %v2429_v49 = vpop.f32.mrf.mxu1 }
 0x18d   :  { %2760 = vst [vmem:[#allocation30_spill] sm:$0xff] %v2429_v49  ;;  %v2431_v59 = vpop.f32.mrf.mxu0 }
 0x18e   :  { %v2433_v63 = vpop.f32.mrf.mxu1 }
 0x18f   :  { %v2435_v5 = vpop.f32.mrf.mxu0 }
 0x190   :  { %v2437_v60 = vpop.f32.mrf.mxu1 }
 0x191   :  { %v2439_v6 = vpop.f32.mrf.mxu0 }
 0x192   :  { %v2441_v7 = vpop.f32.mrf.mxu1 }
 0x193   :  { %v2443_v10 = vpop.f32.mrf.mxu0 }
 0x194   :  { %v2445_v52 = vpop.f32.mrf.mxu1 }
 0x195   :  { %v2450_v9 = vpop.f32.mrf.mxu0 }
 0x196   :  { %v2452_v11 = vpop.f32.mrf.mxu1 }
 0x197   :  { %v2454_v12 = vpop.f32.mrf.mxu0 }
 0x198   :  { %v2456_v13 = vpop.f32.mrf.mxu1 }
 0x199   :  { %v2458_v14 = vpop.f32.mrf.mxu0 }
 0x19a   :  { %v2460_v15 = vpop.f32.mrf.mxu1 }
 0x19b   :  { %v2462_v16 = vpop.f32.mrf.mxu0 }
 0x19c   :  { %v2464_v17 = vpop.f32.mrf.mxu1 }
 0x19d   :  { %v2466_v18 = vpop.f32.mrf.mxu0 }
 0x19e   :  { %v2468_v19 = vpop.f32.mrf.mxu1 }
 0x19f   :  { %v2470_v22 = vpop.f32.mrf.mxu0 }
 0x1a0   :  { %v2472_v23 = vpop.f32.mrf.mxu1 }
 0x1a1   :  { %v993_v27 = vpop.f32.mrf.mxu0 }
 0x1a2   :  { %v2474_v2 = vpop.f32.mrf.mxu1 }
 0x1a3   :  { %v997_v3 = vpop.f32.mrf.mxu0 }
 0x1a4   :  { %v1254_v0 = vpop.f32.mrf.mxu1 }
 0x1a5   :  { %v999_v21 = vpop.f32.mrf.mxu0 }
 0x1a6   :  { %v1256_v28 = vpop.f32.mrf.mxu1 }
 0x1a7   :  { %v1003_v30 = vpop.f32.mrf.mxu0 }
 0x1a8   :  { %v1260_v31 = vpop.f32.mrf.mxu1  ;;  %v1004_v54 = vadd.f32 %v1003_v30, %v670_v1 }
 0x1a9   :  { %v1005_v32 = vpop.f32.mrf.mxu0 }
 0x1aa   :  { %v1262_v33 = vpop.f32.mrf.mxu1  ;;  %v1006_v48 = vadd.f32 %v1005_v32, %v670_v1 }
 0x1ab   :  { %v1009_v37 = vpop.f32.mrf.mxu0  ;;  %v1263_v61 = vadd.f32 %v1262_v33, %v670_v1 }
 0x1ac   :  { %v1266_v38 = vpop.f32.mrf.mxu1  ;;  %v1010_v26 = vadd.f32 %v1009_v37, %v675_v20  ;;  %v1426_v30 = vmax.f32 %v1006_v48, 0.0  ;;  %v988_v48 = vadd.f32 %v2466_v18, %v2476_v8  ;;  %v982_v18 = vadd.f32 %v2458_v14, %v2478_v39 }
 0x1ad   :  { %v1011_v34 = vpop.f32.mrf.mxu0  ;;  %v1267_v55 = vadd.f32 %v1266_v38, %v675_v20  ;;  %v1237_v38 = vadd.f32 %v2456_v13, %v2478_v39  ;;  %v1231_v13 = vadd.f32 %v2445_v52, %v2480_v47 }
 0x1ae   :  { %v1268_v35 = vpop.f32.mrf.mxu1  ;;  %v1012_v44 = vadd.f32 %v1011_v34, %v675_v20 }
 0x1af   :  { %v1015_v24 = vpop.f32.mrf.mxu0  ;;  %v1269_v50 = vadd.f32 %v1268_v35, %v675_v20  ;;  %v2490_v35 = vpop.permute.xlu1 %639  ;;  %v1257_v20 = vadd.f32 %v1256_v28, %v665_v29 }
 0x1b0   :  { %v1272_v41 = vpop.f32.mrf.mxu1  ;;  %v1016_v43 = vadd.f32 %v1015_v24, %v680_v25  ;;  %v1430_v49 = vmax.f32 %v1012_v44, 0.0  ;;  %v992_v44 = vadd.f32 %v2470_v22, %v660_v36  ;;  %v986_v22 = vadd.f32 %v2462_v16, %v2476_v8 }
 0x1b1   :  { %v1017_v40 = vpop.f32.mrf.mxu0  ;;  %v1273_v42 = vadd.f32 %v1272_v41, %v680_v25  ;;  %v1261_v41 = vadd.f32 %v1260_v31, %v670_v1  ;;  %v1239_v31 = vadd.f32 %v2460_v15, %v2478_v39  ;;  %v974_v15 = vadd.f32 %v2443_v10, %v2480_v47 }
 0x1b2   :  { %v1018_v45 = vadd.f32 %v1017_v40, %v680_v25  ;;  %v1274_v4 = vpop.f32.mrf.mxu1  ;;  %v1433_v24 = vmax.f32 %v1016_v43, 0.0  ;;  %v1000_v40 = vadd.f32 %v999_v21, %v665_v29  ;;  %v994_v43 = vadd.f32 %v993_v27, %v660_v36 }
 0x1b3   :  { %v1275_v46 = vadd.f32 %v1274_v4, %v680_v25  ;;  %v2482_v53 = vpop.f32.mrf.mxu0  ;;  %v1435_v58 = vmax.f32 %v1273_v42, 0.0  ;;  %v998_v4 = vadd.f32 %v997_v3, %v665_v29  ;;  %v1432_v25 = vmax.f32 %v1269_v50, 0.0  ;;  %v2496_v42 = vpop.permute.xlu0 %634 }
 0x1b4   :  { %2761 = vst [vmem:[#allocation31_spill] sm:$0xff] %v2482_v53  ;;  %v1434_v51 = vmax.f32 %v1018_v45, 0.0  ;;  %v2484_v57 = vpop.f32.mrf.mxu1  ;;  %v1429_v45 = vmax.f32 %v1010_v26, 0.0  ;;  %v1431_v21 = vmax.f32 %v1267_v55, 0.0  ;;  %v1425_v26 = vmax.f32 %v1004_v54, 0.0  ;;  %v2519_v16 = vpop.permute.xlu1 %629 }
 0x1b5   :  { %2762 = vst [vmem:[#allocation32_spill] sm:$0xff] %v2484_v57  ;;  %v1436_v56 = vmax.f32 %v1275_v46, 0.0  ;;  %v2486_v34 = vpop.f32.mrf.mxu0  ;;  %v1255_v46 = vadd.f32 %v1254_v0, %v665_v29  ;;  %v1428_v50 = vmax.f32 %v1263_v61, 0.0  ;;  %v1249_v55 = vadd.f32 %v2472_v23, %v660_v36 }
 0x1b6   :  { %2763 = vst [vmem:[#allocation33_spill] sm:$0xff] %v2486_v34  ;;  %v2488_v37 = vpop.f32.mrf.mxu1  ;;  %1509 = vmatprep.subr.mxu0 %v1434_v51  ;;  %v1251_v51 = vadd.f32 %v2474_v2, %v660_v36  ;;  %v1245_v54 = vadd.f32 %v2468_v19, %v2476_v8  ;;  %v1421_v61 = vmax.f32 %v998_v4, 0.0  ;;  %v1424_v27 = vmax.f32 %v1257_v20, 0.0 }
 0x1b7   :  { %2764 = vst [vmem:[#allocation34_spill] sm:$0xff] %v2488_v37  ;;  %v2492_v32 = vpop.f32.mrf.mxu0  ;;  %1510 = vmatpush1.msra.mxu0 %v1433_v24  ;;  %1580 = vmatprep.subr.mxu1 %v1436_v56  ;;  %v1422_v56 = vmax.f32 %v1000_v40, 0.0  ;;  %v1243_v23 = vadd.f32 %v2464_v17, %v2476_v8  ;;  %v1418_v0 = vmax.f32 %v994_v43, 0.0  ;;  %v1423_v28 = vmax.f32 %v1255_v46, 0.0 }
 0x1b8   :  { %2765 = vst [vmem:[#allocation35_spill] sm:$0xff] %v2492_v32  ;;  %v2494_v1 = vpop.f32.mrf.mxu1  ;;  %1511 = vmatprep.subr.mxu0 %v1430_v49  ;;  %1581 = vmatpush1.msra.mxu1 %v1435_v58  ;;  %v1427_v49 = vmax.f32 %v1261_v41, 0.0  ;;  %v980_v19 = vadd.f32 %v2454_v12, %v2478_v39  ;;  %v1417_v33 = vmax.f32 %v992_v44, 0.0  ;;  %v1420_v36 = vmax.f32 %v1251_v51, 0.0  ;;  %v2533_v12 = vpop.permute.xlu0 %624 }
 0x1b9   :  { %2766 = vst [vmem:[#allocation36_spill] sm:$0xff] %v2494_v1  ;;  %v2500_v3 = vpop.f32.mrf.mxu0  ;;  %1512 = vmatpush1.msra.mxu0 %v1429_v45  ;;  %1582 = vmatprep.subr.mxu1 %v1432_v25  ;;  %v976_v17 = vadd.f32 %v2450_v9, %v2480_v47  ;;  %v1414_v8 = vmax.f32 %v988_v48, 0.0  ;;  %v1419_v24 = vmax.f32 %v1249_v55, 0.0  ;;  %v1233_v41 = vadd.f32 %v2452_v11, %v2480_v47 }
 0x1ba   :  { %2767 = vst [vmem:[#allocation37_spill] sm:$0xff] %v2500_v3  ;;  %v2505_v58 = vpop.f32.mrf.mxu1  ;;  %1513 = vmatprep.subr.mxu0 %v1426_v30  ;;  %1583 = vmatpush1.msra.mxu1 %v1431_v21  ;;  %v1413_v4 = vmax.f32 %v986_v22, 0.0  ;;  %v1416_v20 = vmax.f32 %v1245_v54, 0.0  ;;  %v970_v39 = vadd.f32 %v2439_v6, %v2490_v35  ;;  %v1410_v45 = vmax.f32 %v982_v18, 0.0 }
 0x1bb   :  { %2768 = vst [vmem:[#allocation38_spill] sm:$0xff] %v2505_v58  ;;  %v2511_v2 = vpop.f32.mrf.mxu0  ;;  %1514 = vmatpush1.msra.mxu0 %v1425_v26  ;;  %1584 = vmatprep.subr.mxu1 %v1428_v50  ;;  %v1415_v25 = vmax.f32 %v1243_v23, 0.0  ;;  %v968_v10 = vadd.f32 %v2435_v5, %v2490_v35  ;;  %v1227_v11 = vadd.f32 %v2441_v7, %v2490_v35  ;;  %v1409_v46 = vmax.f32 %v980_v19, 0.0  ;;  %v620_v5 = vpop.permute.xlu1 %619 }
 0x1bc   :  { %2769 = vst [vmem:[#allocation39_spill] sm:$0xff] %v2511_v2  ;;  %v2517_v29 = vpop.f32.mrf.mxu1  ;;  %1515 = vmatprep.subr.mxu0 %v1422_v56  ;;  %1585 = vmatpush1.msra.mxu1 %v1427_v49  ;;  %v1412_v30 = vmax.f32 %v1239_v31, 0.0  ;;  %v964_v47 = vadd.f32 %v2431_v59, %v2496_v42  ;;  %v1225_v6 = vadd.f32 %v2437_v60, %v2490_v35  ;;  %v1406_v52 = vmax.f32 %v976_v17, 0.0  ;;  %v2778_v59 = vld [vmem:[#allocation28_spill] sm:$0xff]  ;;  %v2779_v35 = vld [vmem:[#allocation30_spill] sm:$0xff]  ;;  %v2785_v31 = vld [vmem:[#allocation27_spill] sm:$0xff] }
 0x1bd   :  { %2770 = vst [vmem:[#allocation40_spill] sm:$0xff] %v2517_v29  ;;  %v2525_v14 = vpop.f32.mrf.mxu0  ;;  %1516 = vmatpush1.msra.mxu0 %v1421_v61  ;;  %1586 = vmatprep.subr.mxu1 %v1424_v27  ;;  %v1411_v44 = vmax.f32 %v1237_v38, 0.0  ;;  %v962_v7 = vadd.f32 %v2427_v62, %v2496_v42  ;;  %v1221_v26 = vadd.f32 %v2433_v63, %v2496_v42  ;;  %v1405_v50 = vmax.f32 %v974_v15, 0.0  ;;  %v615_v62 = vpop.permute.xlu0 %614  ;;  %v2781_v63 = vld [vmem:[#allocation26_spill] sm:$0xff]  ;;  %v2782_v27 = vld [vmem:[#allocation29_spill] sm:$0xff] }
 0x1be   :  { %2771 = vst [vmem:[#allocation41_spill] sm:$0xff] %v2525_v14  ;;  %v2531_v40 = vpop.f32.mrf.mxu1  ;;  %1517 = vmatprep.subr.mxu0 %v1418_v0  ;;  %1587 = vmatpush1.msra.mxu1 %v1423_v28  ;;  %v1408_v48 = vmax.f32 %v1233_v41, 0.0  ;;  %v958_v60 = vadd.f32 %v2778_v59, %v2519_v16  ;;  %v1219_v56 = vadd.f32 %v2779_v35, %v2496_v42  ;;  %v1402_v49 = vmax.f32 %v970_v39, 0.0  ;;  %v2784_v42 = vld [vmem:[#allocation24_spill] sm:$0xff]  ;;  %v2788_v15 = vld [vmem:[#allocation25_spill] sm:$0xff] }
 0x1bf   :  { %2772 = vst [vmem:[#allocation42_spill] sm:$0xff] %v2531_v40  ;;  %v2539_v9 = vpop.f32.mrf.mxu0  ;;  %1518 = vmatpush1.msra.mxu0 %v1417_v33  ;;  %1588 = vmatprep.subr.mxu1 %v1420_v36  ;;  %v1407_v22 = vmax.f32 %v1231_v13, 0.0  ;;  %v956_v61 = vadd.f32 %v2781_v63, %v2519_v16  ;;  %v1215_v18 = vadd.f32 %v2782_v27, %v2519_v16  ;;  %v1401_v23 = vmax.f32 %v968_v10, 0.0  ;;  %v2790_v13 = vld [vmem:[#allocation20_spill] sm:$0xff]  ;;  %v2799_v63 = vld [vmem:[#allocation14_spill] sm:$0xff] }
 0x1c0   :  { %2773 = vst [vmem:[#allocation43_spill] sm:$0xff] %v2539_v9  ;;  %v2545_v43 = vpop.f32.mrf.mxu1  ;;  %1519 = vmatprep.subr.mxu0 %v1414_v8  ;;  %1589 = vmatpush1.msra.mxu1 %v1419_v24  ;;  %v1404_v0 = vmax.f32 %v1227_v11, 0.0  ;;  %v952_v19 = vadd.f32 %v2784_v42, %v2533_v12  ;;  %v1213_v33 = vadd.f32 %v2785_v31, %v2519_v16  ;;  %v1398_v36 = vmax.f32 %v964_v47, 0.0  ;;  %v2787_v8 = vld [vmem:[#allocation22_spill] sm:$0xff]  ;;  %v2801_v31 = vld [vmem:[#allocation12_spill] sm:$0xff] }
 0x1c1   :  { %2774 = vst [vmem:[#allocation44_spill] sm:$0xff] %v2545_v43  ;;  %v2551_v21 = vpop.f32.mrf.mxu0  ;;  %1520 = vmatpush1.msra.mxu0 %v1413_v4  ;;  %1590 = vmatprep.subr.mxu1 %v1416_v20  ;;  %v1403_v17 = vmax.f32 %v1225_v6, 0.0  ;;  %v950_v24 = vadd.f32 %v2787_v8, %v2533_v12  ;;  %v1209_v41 = vadd.f32 %v2788_v15, %v2533_v12  ;;  %v1397_v4 = vmax.f32 %v962_v7, 0.0  ;;  %v2793_v47 = vld [vmem:[#allocation18_spill] sm:$0xff] }
 0x1c2   :  { %2775 = vst [vmem:[#allocation45_spill] sm:$0xff] %v2551_v21  ;;  %v2557_v51 = vpop.f32.mrf.mxu1  ;;  %1521 = vmatprep.subr.mxu0 %v1410_v45  ;;  %1591 = vmatpush1.msra.mxu1 %v1415_v25  ;;  %v1400_v20 = vmax.f32 %v1221_v26, 0.0  ;;  %v946_v16 = vadd.f32 %v2790_v13, %v620_v5  ;;  %v2791_v45 = vld [vmem:[#allocation23_spill] sm:$0xff]  ;;  %v1394_v10 = vmax.f32 %v958_v60, 0.0  ;;  %v1399_v11 = vmax.f32 %v1219_v56, 0.0  ;;  %v2804_v15 = vld [vmem:[#allocation10_spill] sm:$0xff] }
 0x1c3   :  { %2776 = vst [vmem:[#allocation46_spill] sm:$0xff] %v2557_v51  ;;  %v2563_v55 = vpop.f32.mrf.mxu0  ;;  %1522 = vmatpush1.msra.mxu0 %v1409_v46  ;;  %1592 = vmatprep.subr.mxu1 %v1412_v30  ;;  %v1207_v25 = vadd.f32 %v2791_v45, %v2533_v12  ;;  %v610_v30 = vpop.permute.xlu1 %609  ;;  %v944_v6 = vadd.f32 %v2793_v47, %v620_v5  ;;  %v1393_v7 = vmax.f32 %v956_v61, 0.0  ;;  %v1396_v26 = vmax.f32 %v1215_v18, 0.0  ;;  %v2797_v12 = vld [vmem:[#allocation19_spill] sm:$0xff] }
 0x1c4   :  { %2777 = vst [vmem:[#allocation47_spill] sm:$0xff] %v2563_v55  ;;  %v2569_v54 = vpop.f32.mrf.mxu1  ;;  %1523 = vmatprep.subr.mxu0 %v1406_v52  ;;  %1593 = vmatpush1.msra.mxu1 %v1411_v44  ;;  %v2794_v52 = vld [vmem:[#allocation21_spill] sm:$0xff]  ;;  %v1201_v60 = vadd.f32 %v2797_v12, %v620_v5  ;;  %v1390_v35 = vmax.f32 %v952_v19, 0.0  ;;  %v1395_v56 = vmax.f32 %v1213_v33, 0.0  ;;  %v938_v27 = vadd.f32 %v2799_v63, %v615_v62  ;;  %v2807_v47 = vld [vmem:[#allocation11_spill] sm:$0xff] }
 0x1c5   :  { %2780 = vst [vmem:[#allocation28_spill] sm:$0xff] %v2569_v54  ;;  %v2575_v28 = vpop.f32.mrf.mxu0  ;;  %1524 = vmatpush1.msra.mxu0 %v1405_v50  ;;  %1594 = vmatprep.subr.mxu1 %v1408_v48  ;;  %v1203_v44 = vadd.f32 %v2794_v52, %v620_v5  ;;  %v2796_v48 = vld [vmem:[#allocation16_spill] sm:$0xff]  ;;  %v1389_v18 = vmax.f32 %v950_v24, 0.0  ;;  %v2802_v5 = vld [vmem:[#allocation15_spill] sm:$0xff]  ;;  %v1386_v33 = vmax.f32 %v946_v16, 0.0  ;;  %v1385_v24 = vmax.f32 %v944_v6, 0.0 }
 0x1c6   :  { %2783 = vst [vmem:[#allocation30_spill] sm:$0xff] %v2575_v28  ;;  %v2581_v38 = vpop.f32.mrf.mxu1  ;;  %1525 = vmatprep.subr.mxu0 %v1402_v49  ;;  %1595 = vmatpush1.msra.mxu1 %v1407_v22  ;;  %v940_v59 = vadd.f32 %v2796_v48, %v615_v62  ;;  %v605_v22 = vpop.permute.xlu0 %604  ;;  %v1195_v19 = vadd.f32 %v2802_v5, %v615_v62  ;;  %v2810_v48 = vld [vmem:[#allocation9_spill] sm:$0xff]  ;;  %v1381_v6 = vmax.f32 %v938_v27, 0.0 }
 0x1c7   :  { %2786 = vst [vmem:[#allocation26_spill] sm:$0xff] %v2581_v38  ;;  %v2587_v39 = vpop.f32.mrf.mxu0  ;;  %1526 = vmatpush1.msra.mxu0 %v1401_v23  ;;  %1596 = vmatprep.subr.mxu1 %v1404_v0  ;;  %v2800_v23 = vld [vmem:[#allocation17_spill] sm:$0xff]  ;;  %v1392_v0 = vmax.f32 %v1209_v41, 0.0  ;;  %v1388_v41 = vmax.f32 %v1203_v44, 0.0  ;;  %v1185_v12 = vadd.f32 %v2810_v48, %v605_v22 }
 0x1c8   :  { %2789 = vst [vmem:[#allocation29_spill] sm:$0xff] %v2587_v39  ;;  %v2592_v46 = vpop.f32.mrf.mxu1  ;;  %1527 = vmatprep.subr.mxu0 %v1398_v36  ;;  %1597 = vmatpush1.msra.mxu1 %v1403_v17  ;;  %v1197_v61 = vadd.f32 %v2800_v23, %v615_v62  ;;  %v934_v36 = vadd.f32 %v2801_v31, %v610_v30  ;;  %v1391_v17 = vmax.f32 %v1207_v25, 0.0  ;;  %v1382_v16 = vmax.f32 %v940_v59, 0.0 }
 0x1c9   :  { %2792 = vst [vmem:[#allocation24_spill] sm:$0xff] %v2592_v46  ;;  %v2596_v50 = vpop.f32.mrf.mxu0  ;;  %1528 = vmatpush1.msra.mxu0 %v1397_v4  ;;  %1598 = vmatprep.subr.mxu1 %v1400_v20  ;;  %v932_v4 = vadd.f32 %v2804_v15, %v610_v30  ;;  %v2805_v20 = vld [vmem:[#allocation13_spill] sm:$0xff]  ;;  %v1189_v62 = vadd.f32 %v2807_v47, %v610_v30  ;;  %v1387_v25 = vmax.f32 %v1201_v60, 0.0 }
 0x1ca   :  { %2795 = vst [vmem:[#allocation27_spill] sm:$0xff] %v2596_v50  ;;  %v2600_v49 = vpop.f32.mrf.mxu1  ;;  %1529 = vmatprep.subr.mxu0 %v1394_v10  ;;  %1599 = vmatpush1.msra.mxu1 %v1399_v11  ;;  %v1191_v13 = vadd.f32 %v2805_v20, %v610_v30  ;;  %v2806_v10 = vld [vmem:[#allocation8_spill] sm:$0xff]  ;;  %v1384_v44 = vmax.f32 %v1197_v61, 0.0  ;;  %v1378_v23 = vmax.f32 %v934_v36, 0.0  ;;  %v1383_v30 = vmax.f32 %v1195_v19, 0.0 }
 0x1cb   :  { %2798 = vst [vmem:[#allocation22_spill] sm:$0xff] %v2600_v49  ;;  %v2604_v42 = vpop.f32.mrf.mxu0  ;;  %1530 = vmatpush1.msra.mxu0 %v1393_v7  ;;  %1600 = vmatprep.subr.mxu1 %v1396_v26  ;;  %v928_v11 = vadd.f32 %v2806_v10, %v605_v22  ;;  %v2809_v7 = vld [vmem:[#allocation6_spill] sm:$0xff]  ;;  %v1377_v60 = vmax.f32 %v932_v4, 0.0  ;;  %v1379_v61 = vmax.f32 %v1189_v62, 0.0  ;;  %v760_v62 = vpop.permute.xlu1 %759 }
 0x1cc   :  { %v2608_v8 = vpop.f32.mrf.mxu1  ;;  %1531 = vmatprep.subr.mxu0 %v1390_v35  ;;  %1601 = vmatpush1.msra.mxu1 %v1395_v56  ;;  %v926_v26 = vadd.f32 %v2809_v7, %v605_v22  ;;  %v2811_v56 = vld [vmem:[#allocation7_spill] sm:$0xff]  ;;  %v755_v7 = vpop.permute.xlu0 %754 }
 0x1cd   :  { %2803 = vst [vmem:[#allocation25_spill] sm:$0xff] %v2608_v8  ;;  %v2612_v45 = vpop.f32.mrf.mxu0  ;;  %1532 = vmatpush1.msra.mxu0 %v1389_v18  ;;  %1602 = vmatprep.subr.mxu1 %v1392_v0  ;;  %v1183_v63 = vadd.f32 %v2811_v56, %v605_v22  ;;  %v1380_v18 = vmax.f32 %v1191_v13, 0.0  ;;  %v1374_v27 = vmax.f32 %v928_v11, 0.0  ;;  %v1376_v22 = vmax.f32 %v1185_v12, 0.0 }
 0x1ce   :  { %v2616_v52 = vpop.f32.mrf.mxu1  ;;  %1533 = vmatprep.subr.mxu0 %v1386_v33  ;;  %1603 = vmatpush1.msra.mxu1 %v1391_v17  ;;  %v1373_v5 = vmax.f32 %v926_v26, 0.0 }
 0x1cf   :  { %2808 = vst [vmem:[#allocation20_spill] sm:$0xff] %v2616_v52  ;;  %v2620_v35 = vpop.f32.mrf.mxu0  ;;  %1534 = vmatpush1.msra.mxu0 %v1385_v24  ;;  %1604 = vmatprep.subr.mxu1 %v1388_v41  ;;  %v1375_v19 = vmax.f32 %v1183_v63, 0.0 }
 0x1d0   :  { %v2623_v59 = vpop.f32.mrf.mxu1  ;;  %1535 = vmatprep.subr.mxu0 %v1382_v16  ;;  %1605 = vmatpush1.msra.mxu1 %v1387_v25 }
 0x1d1   :  { %v2625_v0 = vpop.f32.mrf.mxu0  ;;  %1536 = vmatpush1.msra.mxu0 %v1381_v6  ;;  %1606 = vmatprep.subr.mxu1 %v1384_v44  ;;  %v750_v44 = vpop.permute.xlu1 %749 }
 0x1d2   :  { %v2627_v31 = vpop.f32.mrf.mxu1  ;;  %1537 = vmatprep.subr.mxu0 %v1378_v23  ;;  %1607 = vmatpush1.msra.mxu1 %v1383_v30  ;;  %v745_v23 = vpop.permute.xlu0 %744 }
 0x1d3   :  { %v2629_v36 = vpop.f32.mrf.mxu0  ;;  %1538 = vmatpush1.msra.mxu0 %v1377_v60  ;;  %1608 = vmatprep.subr.mxu1 %v1380_v18 }
 0x1d4   :  { %v2631_v33 = vpop.f32.mrf.mxu1  ;;  %1539 = vmatprep.subr.mxu0 %v1374_v27  ;;  %1609 = vmatpush1.msra.mxu1 %v1379_v61 }
 0x1d5   :  { %v2633_v17 = vpop.f32.mrf.mxu0  ;;  %1540 = vmatpush1.msra.mxu0 %v1373_v5  ;;  %1610 = vmatprep.subr.mxu1 %v1376_v22  ;;  %v740_v61 = vpop.permute.xlu1 %739 }
 0x1d6   :  { %v2635_v15 = vpop.f32.mrf.mxu1  ;;  %1611 = vmatpush1.msra.mxu1 %v1375_v19  ;;  %v735_v19 = vpop.permute.xlu0 %734 }
 0x1d7   :  { %v2637_v4 = vpop.f32.mrf.mxu0 }
 0x1d8   :  { %v2639_v20 = vpop.f32.mrf.mxu1 }
 0x1d9   :  { %v2641_v13 = vpop.f32.mrf.mxu0  ;;  %v2655_v34 = vpop.permute.xlu1 %729 }
 0x1da   :  { %v2643_v24 = vpop.f32.mrf.mxu1  ;;  %v2657_v43 = vpop.permute.xlu0 %724 }
 0x1db   :  { %v2645_v41 = vpop.f32.mrf.mxu0 }
 0x1dc   :  { %v2647_v10 = vpop.f32.mrf.mxu1 }
 0x1dd   :  { %v2649_v11 = vpop.f32.mrf.mxu0 }
 0x1de   :  { %v2651_v47 = vpop.f32.mrf.mxu1 }
 0x1df   :  { %v1087_v16 = vpop.f32.mrf.mxu0 }
 0x1e0   :  { %v2653_v25 = vpop.f32.mrf.mxu1 }
 0x1e1   :  { %v1089_v26 = vpop.f32.mrf.mxu0 }
 0x1e2   :  { %v1346_v48 = vpop.f32.mrf.mxu1 }
 0x1e3   :  { %v1093_v12 = vpop.f32.mrf.mxu0 }
 0x1e4   :  { %v1350_v6 = vpop.f32.mrf.mxu1 }
 0x1e5   :  { %v1095_v56 = vpop.f32.mrf.mxu0 }
 0x1e6   :  { %v1352_v63 = vpop.f32.mrf.mxu1  ;;  %v1096_v39 = vadd.f32 %v1095_v56, %v745_v23 }
 0x1e7   :  { %v1099_v30 = vpop.f32.mrf.mxu0 }
 0x1e8   :  { %v1356_v60 = vpop.f32.mrf.mxu1  ;;  %v1100_v55 = vadd.f32 %v1099_v30, %v750_v44 }
 0x1e9   :  { %v1101_v18 = vpop.f32.mrf.mxu0  ;;  %v1357_v8 = vadd.f32 %v1356_v60, %v750_v44 }
 0x1ea   :  { %v1358_v27 = vpop.f32.mrf.mxu1  ;;  %v1102_v54 = vadd.f32 %v1101_v18, %v750_v44 }
 0x1eb   :  { %v1105_v5 = vpop.f32.mrf.mxu0  ;;  %v1359_v46 = vadd.f32 %v1358_v27, %v750_v44 }
 0x1ec   :  { %v1362_v22 = vpop.f32.mrf.mxu1  ;;  %v1106_v14 = vadd.f32 %v1105_v5, %v755_v7 }
 0x1ed   :  { %v1107_v57 = vpop.f32.mrf.mxu0  ;;  %v1363_v21 = vadd.f32 %v1362_v22, %v755_v7  ;;  %v2814_v22 = vld [vmem:[#allocation25_spill] sm:$0xff] }
 0x1ee   :  { %v1364_v37 = vpop.f32.mrf.mxu1  ;;  %v1108_v29 = vadd.f32 %v1107_v57, %v755_v7  ;;  %v2659_v57 = vpop.permute.xlu1 %719  ;;  %v1493_v52 = vmax.f32 %v1106_v14, 0.0  ;;  %v1345_v14 = vadd.f32 %v2653_v25, %v740_v61 }
 0x1ef   :  { %v1111_v53 = vpop.f32.mrf.mxu0  ;;  %v1365_v51 = vadd.f32 %v1364_v37, %v755_v7  ;;  %v1090_v37 = vadd.f32 %v1089_v26, %v740_v61  ;;  %v1084_v7 = vadd.f32 %v2649_v11, %v735_v19 }
 0x1f0   :  { %v1368_v1 = vpop.f32.mrf.mxu1  ;;  %v1112_v58 = vadd.f32 %v1111_v53, %v760_v62  ;;  %v1494_v53 = vmax.f32 %v1108_v29, 0.0  ;;  %v1347_v29 = vadd.f32 %v1346_v48, %v740_v61  ;;  %v1483_v26 = vmax.f32 %v1345_v14, 0.0  ;;  %v2820_v14 = vld [vmem:[#allocation26_spill] sm:$0xff] }
 0x1f1   :  { %v1113_v32 = vpop.f32.mrf.mxu0  ;;  %v1369_v3 = vadd.f32 %v1368_v1, %v760_v62  ;;  %v1353_v1 = vadd.f32 %v1352_v63, %v745_v23  ;;  %v1496_v5 = vmax.f32 %v1365_v51, 0.0  ;;  %v1486_v51 = vmax.f32 %v1096_v39, 0.0 }
 0x1f2   :  { %v1114_v40 = vadd.f32 %v1113_v32, %v760_v62  ;;  %v1370_v2 = vpop.f32.mrf.mxu1  ;;  %v1497_v28 = vmax.f32 %v1112_v58, 0.0  ;;  %v1094_v32 = vadd.f32 %v1093_v12, %v745_v23  ;;  %v2661_v58 = vpop.permute.xlu0 %714  ;;  %v1478_v25 = vmax.f32 %v1084_v7, 0.0 }
 0x1f3   :  { %v1371_v9 = vadd.f32 %v1370_v2, %v760_v62  ;;  %v1499_v50 = vmax.f32 %v1369_v3, 0.0  ;;  %v1351_v2 = vadd.f32 %v1350_v6, %v745_v23  ;;  %v1495_v62 = vmax.f32 %v1363_v21, 0.0  ;;  %v710_v39 = vpop.permute.xlu1 %709 }
 0x1f4   :  { %v1498_v38 = vmax.f32 %v1114_v40, 0.0  ;;  %v1490_v40 = vmax.f32 %v1102_v54, 0.0  ;;  %v1489_v3 = vmax.f32 %v1100_v55, 0.0  ;;  %v1082_v21 = vadd.f32 %v2645_v41, %v735_v19 }
 0x1f5   :  { %v1500_v49 = vmax.f32 %v1371_v9, 0.0  ;;  %v1088_v9 = vadd.f32 %v1087_v16, %v740_v61  ;;  %v1341_v54 = vadd.f32 %v2651_v47, %v735_v19  ;;  %v1078_v55 = vadd.f32 %v2641_v13, %v2655_v34  ;;  %v2813_v61 = vld [vmem:[#allocation27_spill] sm:$0xff] }
 0x1f6   :  { %1541 = vmatprep.subr.mxu0 %v1498_v38  ;;  %v1492_v38 = vmax.f32 %v1359_v46, 0.0  ;;  %v1339_v46 = vadd.f32 %v2647_v10, %v735_v19  ;;  %v1487_v11 = vmax.f32 %v1351_v2, 0.0  ;;  %v1335_v41 = vadd.f32 %v2643_v24, %v2655_v34  ;;  %v705_v48 = vpop.permute.xlu0 %704 }
 0x1f7   :  { %1542 = vmatpush2.msra.mxu0 %v1497_v28  ;;  %1612 = vmatprep.subr.mxu1 %v1500_v49  ;;  %v1491_v28 = vmax.f32 %v1357_v8, 0.0  ;;  %v1488_v49 = vmax.f32 %v1353_v1, 0.0  ;;  %v1076_v8 = vadd.f32 %v2637_v4, %v2655_v34  ;;  %v1481_v47 = vmax.f32 %v1088_v9, 0.0  ;;  %v700_v30 = vpop.permute.xlu1 %699  ;;  %v2818_v9 = vld [vmem:[#allocation24_spill] sm:$0xff] }
 0x1f8   :  { %1543 = vmatprep.subr.mxu0 %v1494_v53  ;;  %1613 = vmatpush2.msra.mxu1 %v1499_v50  ;;  %v1485_v50 = vmax.f32 %v1094_v32, 0.0  ;;  %v1484_v16 = vmax.f32 %v1347_v29, 0.0  ;;  %v1072_v13 = vadd.f32 %v2633_v17, %v2657_v43  ;;  %v1333_v10 = vadd.f32 %v2639_v20, %v2655_v34  ;;  %v2815_v32 = vld [vmem:[#allocation29_spill] sm:$0xff] }
 0x1f9   :  { %1544 = vmatpush2.msra.mxu0 %v1493_v52  ;;  %1614 = vmatprep.subr.mxu1 %v1496_v5  ;;  %v1482_v52 = vmax.f32 %v1090_v37, 0.0  ;;  %v1070_v4 = vadd.f32 %v2629_v36, %v2657_v43  ;;  %v1329_v24 = vadd.f32 %v2635_v15, %v2657_v43  ;;  %v1477_v12 = vmax.f32 %v1082_v21, 0.0 }
 0x1fa   :  { %1545 = vmatprep.subr.mxu0 %v1490_v40  ;;  %1615 = vmatpush2.msra.mxu1 %v1495_v62  ;;  %v1480_v6 = vmax.f32 %v1341_v54, 0.0  ;;  %v1066_v17 = vadd.f32 %v2625_v0, %v2659_v57  ;;  %v1327_v34 = vadd.f32 %v2631_v33, %v2657_v43  ;;  %v1474_v20 = vmax.f32 %v1078_v55, 0.0  ;;  %v2817_v40 = vld [vmem:[#allocation30_spill] sm:$0xff]  ;;  %v2821_v54 = vld [vmem:[#allocation45_spill] sm:$0xff] }
 0x1fb   :  { %1546 = vmatpush2.msra.mxu0 %v1489_v3  ;;  %1616 = vmatprep.subr.mxu1 %v1492_v38  ;;  %v1479_v44 = vmax.f32 %v1339_v46, 0.0  ;;  %v1064_v36 = vadd.f32 %v2620_v35, %v2659_v57  ;;  %v1323_v15 = vadd.f32 %v2627_v31, %v2659_v57  ;;  %v1473_v56 = vmax.f32 %v1076_v8, 0.0  ;;  %v2812_v31 = vld [vmem:[#allocation20_spill] sm:$0xff] }
 0x1fc   :  { %1547 = vmatprep.subr.mxu0 %v1486_v51  ;;  %1617 = vmatpush2.msra.mxu1 %v1491_v28  ;;  %v1476_v63 = vmax.f32 %v1335_v41, 0.0  ;;  %v1060_v0 = vadd.f32 %v2612_v45, %v2661_v58  ;;  %v1321_v43 = vadd.f32 %v2623_v59, %v2659_v57  ;;  %v1470_v33 = vmax.f32 %v1072_v13, 0.0  ;;  %v695_v57 = vpop.permute.xlu0 %694  ;;  %v2824_v41 = vld [vmem:[#allocation46_spill] sm:$0xff] }
 0x1fd   :  { %1548 = vmatpush2.msra.mxu0 %v1485_v50  ;;  %1618 = vmatprep.subr.mxu1 %v1488_v49  ;;  %v1475_v23 = vmax.f32 %v1333_v10, 0.0  ;;  %v1058_v35 = vadd.f32 %v2604_v42, %v2661_v58  ;;  %v1317_v60 = vadd.f32 %v2812_v31, %v2661_v58  ;;  %v1469_v18 = vmax.f32 %v1070_v4, 0.0  ;;  %v2816_v42 = vld [vmem:[#allocation22_spill] sm:$0xff]  ;;  %v2822_v49 = vld [vmem:[#allocation28_spill] sm:$0xff]  ;;  %v2825_v10 = vld [vmem:[#allocation41_spill] sm:$0xff] }
 0x1fe   :  { %1549 = vmatprep.subr.mxu0 %v1482_v52  ;;  %1619 = vmatpush2.msra.mxu1 %v1487_v11  ;;  %v1472_v27 = vmax.f32 %v1329_v24, 0.0  ;;  %v1054_v45 = vadd.f32 %v2813_v61, %v710_v39  ;;  %v1315_v59 = vadd.f32 %v2814_v22, %v2661_v58  ;;  %v1466_v19 = vmax.f32 %v1066_v17, 0.0  ;;  %v2819_v58 = vld [vmem:[#allocation47_spill] sm:$0xff]  ;;  %v690_v11 = vpop.permute.xlu1 %689 }
 0x1ff   :  { %1550 = vmatpush2.msra.mxu0 %v1481_v47  ;;  %1620 = vmatprep.subr.mxu1 %v1484_v16  ;;  %v1471_v53 = vmax.f32 %v1327_v34, 0.0  ;;  %v1052_v1 = vadd.f32 %v2815_v32, %v710_v39  ;;  %v1311_v5 = vadd.f32 %v2816_v42, %v710_v39  ;;  %v1465_v37 = vmax.f32 %v1064_v36, 0.0  ;;  %v2828_v34 = vld [vmem:[#allocation42_spill] sm:$0xff] }
 0x200   :  { %1551 = vmatprep.subr.mxu0 %v1478_v25  ;;  %1621 = vmatpush2.msra.mxu1 %v1483_v26  ;;  %v1468_v2 = vmax.f32 %v1323_v15, 0.0  ;;  %v1048_v62 = vadd.f32 %v2817_v40, %v705_v48  ;;  %v1309_v29 = vadd.f32 %v2818_v9, %v710_v39  ;;  %v1462_v3 = vmax.f32 %v1060_v0, 0.0  ;;  %v2823_v39 = vld [vmem:[#allocation43_spill] sm:$0xff]  ;;  %v2826_v26 = vld [vmem:[#allocation44_spill] sm:$0xff]  ;;  %v2829_v15 = vld [vmem:[#allocation37_spill] sm:$0xff] }
 0x201   :  { %1552 = vmatpush2.msra.mxu0 %v1477_v12  ;;  %1622 = vmatprep.subr.mxu1 %v1480_v6  ;;  %v1467_v38 = vmax.f32 %v1321_v43, 0.0  ;;  %v1046_v7 = vadd.f32 %v2819_v58, %v705_v48  ;;  %v1305_v51 = vadd.f32 %v2820_v14, %v705_v48  ;;  %v1461_v28 = vmax.f32 %v1058_v35, 0.0  ;;  %v2827_v6 = vld [vmem:[#allocation39_spill] sm:$0xff]  ;;  %v2832_v35 = vld [vmem:[#allocation38_spill] sm:$0xff] }
 0x202   :  { %1553 = vmatprep.subr.mxu0 %v1474_v20  ;;  %1623 = vmatpush2.msra.mxu1 %v1479_v44  ;;  %v1464_v21 = vmax.f32 %v1317_v60, 0.0  ;;  %v1042_v50 = vadd.f32 %v2821_v54, %v700_v30  ;;  %v1303_v55 = vadd.f32 %v2822_v49, %v705_v48  ;;  %v1458_v46 = vmax.f32 %v1054_v45, 0.0  ;;  %v685_v48 = vpop.permute.xlu0 %684  ;;  %v2834_v45 = vld [vmem:[#allocation36_spill] sm:$0xff]  ;;  %v2836_v32 = vld [vmem:[#allocation34_spill] sm:$0xff] }
 0x203   :  { %1554 = vmatpush2.msra.mxu0 %v1473_v56  ;;  %1624 = vmatprep.subr.mxu1 %v1476_v63  ;;  %v1463_v52 = vmax.f32 %v1315_v59, 0.0  ;;  %v1040_v8 = vadd.f32 %v2823_v39, %v700_v30  ;;  %v1299_v47 = vadd.f32 %v2824_v41, %v700_v30  ;;  %v1457_v16 = vmax.f32 %v1052_v1, 0.0  ;;  %v2830_v63 = vld [vmem:[#allocation40_spill] sm:$0xff]  ;;  %v1501_v14 = vld [vmem:[%s2733_s3] sm:$0xff]  ;;  %s1774_s3 = scalar_lea.vmem %s1662_s6, 512 }
 0x204   :  { %1555 = vmatprep.subr.mxu0 %v1470_v33  ;;  %1625 = vmatpush2.msra.mxu1 %v1475_v23  ;;  %v1460_v13 = vmax.f32 %v1311_v5, 0.0  ;;  %v1036_v25 = vadd.f32 %v2825_v10, %v695_v57  ;;  %v1297_v4 = vadd.f32 %v2826_v26, %v700_v30  ;;  %v1454_v24 = vmax.f32 %v1048_v62, 0.0  ;;  %v2831_v23 = vld [vmem:[#allocation35_spill] sm:$0xff]  ;;  %p1775_p0 = scmp.ne.s32.totalorder %s1662_s6, %s1774_s3  ;;  %p1780_p2 = scmp.lt.s32.totalorder %s1774_s3, %s1774_s3 }
 0x205   :  { %1556 = vmatpush2.msra.mxu0 %v1469_v18  ;;  %1626 = vmatprep.subr.mxu1 %v1472_v27  ;;  %v1459_v12 = vmax.f32 %v1309_v29, 0.0  ;;  %v1034_v17 = vadd.f32 %v2827_v6, %v695_v57  ;;  %v1293_v20 = vadd.f32 %v2828_v34, %v695_v57  ;;  %v1453_v44 = vmax.f32 %v1046_v7, 0.0  ;;  %v2833_v27 = vld [vmem:[#allocation33_spill] sm:$0xff] }
 0x206   :  { %1557 = vmatprep.subr.mxu0 %v1466_v19  ;;  %1627 = vmatpush2.msra.mxu1 %v1471_v53  ;;  %v1456_v36 = vmax.f32 %v1305_v51, 0.0  ;;  %v1030_v56 = vadd.f32 %v2829_v15, %v690_v11  ;;  %v1291_v0 = vadd.f32 %v2830_v63, %v695_v57  ;;  %v1450_v43 = vmax.f32 %v1042_v50, 0.0  ;;  %v2835_v53 = vld [vmem:[#allocation31_spill] sm:$0xff]  ;;  %p1781_p3 = por %p1780_p2, %p1779_p1 }
 0x207   :  { %1558 = vmatpush2.msra.mxu0 %v1465_v37  ;;  %1628 = vmatprep.subr.mxu1 %v1468_v2  ;;  %v1455_v33 = vmax.f32 %v1303_v55, 0.0  ;;  %v1028_v30 = vadd.f32 %v2831_v23, %v690_v11  ;;  %v1287_v31 = vadd.f32 %v2832_v35, %v690_v11  ;;  %v1449_v60 = vmax.f32 %v1040_v8, 0.0  ;;  %v2837_v37 = vld [vmem:[#allocation32_spill] sm:$0xff] }
 0x208   :  { %1559 = vmatprep.subr.mxu0 %v1462_v3  ;;  %1629 = vmatpush2.msra.mxu1 %v1467_v38  ;;  %v1452_v18 = vmax.f32 %v1299_v47, 0.0  ;;  %v1024_v61 = vadd.f32 %v2833_v27, %v685_v48  ;;  %v1285_v22 = vadd.f32 %v2834_v45, %v690_v11  ;;  %v1446_v59 = vmax.f32 %v1036_v25, 0.0  ;;  %p1782_p4 = pnand %p1781_p3, %p1775_p0 }
 0x209   :  { %1560 = vmatpush2.msra.mxu0 %v1461_v28  ;;  %1630 = vmatprep.subr.mxu1 %v1464_v21  ;;  %v1451_v19 = vmax.f32 %v1297_v4, 0.0  ;;  %v1022_v57 = vadd.f32 %v2835_v53, %v685_v48  ;;  %v1281_v1 = vadd.f32 %v2836_v32, %v685_v48  ;;  %v1445_v42 = vmax.f32 %v1034_v17, 0.0  ;;  %v1507_v28 = vpop.permute.xlu1 %1506 }
 0x20a   :  { %1561 = vmatprep.subr.mxu0 %v1458_v46  ;;  %1631 = vmatpush2.msra.mxu1 %v1463_v52  ;;  %v1448_v5 = vmax.f32 %v1293_v20, 0.0  ;;  %v1279_v2 = vadd.f32 %v2837_v37, %v685_v48  ;;  %v1442_v40 = vmax.f32 %v1030_v56, 0.0  ;;  %v1447_v62 = vmax.f32 %v1291_v0, 0.0 }
 0x20b   :  { %1562 = vmatpush2.msra.mxu0 %v1457_v16  ;;  %1632 = vmatprep.subr.mxu1 %v1460_v13  ;;  %v1441_v9 = vmax.f32 %v1028_v30, 0.0  ;;  %v1444_v29 = vmax.f32 %v1287_v31, 0.0  ;;  %v1438_v3 = vmax.f32 %v1024_v61, 0.0  ;;  %v1443_v38 = vmax.f32 %v1285_v22, 0.0 }
 0x20c   :  { %1563 = vmatprep.subr.mxu0 %v1454_v24  ;;  %1633 = vmatpush2.msra.mxu1 %v1459_v12  ;;  %v1437_v58 = vmax.f32 %v1022_v57, 0.0  ;;  %v1440_v7 = vmax.f32 %v1281_v1, 0.0  ;;  %v1439_v51 = vmax.f32 %v1279_v2, 0.0 }
 0x20d   :  { %1564 = vmatpush2.msra.mxu0 %v1453_v44  ;;  %1634 = vmatprep.subr.mxu1 %v1456_v36 }
 0x20e   :  { %1565 = vmatprep.subr.mxu0 %v1450_v43  ;;  %1635 = vmatpush2.msra.mxu1 %v1455_v33 }
 0x20f   :  { %1566 = vmatpush2.msra.mxu0 %v1449_v60  ;;  %1636 = vmatprep.subr.mxu1 %v1452_v18 }
 0x210   :  { %1567 = vmatprep.subr.mxu0 %v1446_v59  ;;  %1637 = vmatpush2.msra.mxu1 %v1451_v19 }
 0x211   :  { %1568 = vmatpush2.msra.mxu0 %v1445_v42  ;;  %1638 = vmatprep.subr.mxu1 %v1448_v5 }
 0x212   :  { %1569 = vmatprep.subr.mxu0 %v1442_v40  ;;  %1639 = vmatpush2.msra.mxu1 %v1447_v62 }
 0x213   :  { %1570 = vmatpush2.msra.mxu0 %v1441_v9  ;;  %1640 = vmatprep.subr.mxu1 %v1444_v29 }
 0x214   :  { %1571 = vmatprep.subr.mxu0 %v1438_v3  ;;  %1641 = vmatpush2.msra.mxu1 %v1443_v38 }
 0x215   :  { %1572 = vmatpush2.msra.mxu0 %v1437_v58  ;;  %1642 = vmatprep.subr.mxu1 %v1440_v7 }
 0x216   :  { %1574 = vmatmul.mubr.f32.vlgmr.msra.gmra.mxu0 %v1501_v14  ;;  %1643 = vmatpush2.msra.mxu1 %v1439_v51 }
 0x217   :  { %1645 = vmatmul.mubr.f32.vlgmr.msra.gmra.mxu1 %v1501_v14 }
 0x2d6   :  { %v1575_v21 = vpop.f32.mrf.mxu0 }
 0x2d7   :  { %v1576_v54 = vadd.f32 %v1575_v21, %v1507_v28  ;;  %v1646_v50 = vpop.f32.mrf.mxu1 }
 0x2d8   :  { %v1647_v49 = vadd.f32 %v1646_v50, %v1507_v28  ;;  %v1577_v55 = vpop.f32.mrf.mxu0 }
 0x2d9   :  { %1651 = vst [vmem:[#allocation3] sm:$0xff] %v1576_v54  ;;  %v1578_v46 = vadd.f32 %v1577_v55, %v1507_v28  ;;  %v1648_v52 = vpop.f32.mrf.mxu1 }
 0x2da   :  { %1653 = vst [vmem:[#allocation3 + $0x10] sm:$0xff] %v1647_v49  ;;  %v1649_v11 = vadd.f32 %v1648_v52, %v1507_v28 }
 0x2db   :  { %1652 = vst [vmem:[#allocation3 + $0x8] sm:$0xff] %v1578_v46 }
 0x2dc   :  { %1654 = vst [vmem:[#allocation3 + $0x18] sm:$0xff] %v1649_v11 }
 0x2dd   :  { %1785 = shalt.err (!%p1782_p4)
}
 0x2de   :  { %1664 = dma.vmem_to_hbm [thread:$0]  %s1662_s6, 512, %s2735_s5, [#allocation4]  }
 0x2df   :  { %1794 = dma.done.wait [#allocation4], 512  }
 0x2e0   :  { %1795 = vsyncadd [#allocation4], 4294966784 }
 0x2e1   :  { %1668 = vsyncpa [#allocation4], 1 }

</bundles_post_ra>
